<compile_context>
chip_gen: v7x
topology: tpu7x:2x2x1
jax: 0.10.0
libtpu: 0.0.40
codegen_flags: <defaults>
</compile_context>

<pallas_src>
import math
import functools
import jax
import jax.numpy as jnp
from jax.experimental import pallas as pl
from jax.experimental.pallas import tpu as pltpu  # noqa: F401  (TPU backend)

# ---- small synthetic "electra-small"-style config ----
VOCAB    = 100
MAX_POS  = 64
EMB      = 16     # embedding_size (ELECTRA-small: != hidden_size -> embeddings_project)
HID      = 32     # hidden_size
NHEAD    = 4
HEAD_DIM = HID // NHEAD
FFN      = 64     # intermediate_size
NLAYER   = 2
LN_EPS   = 1e-12
NEG_INF  = -1e9


def _layer_norm(x, g, b, eps=LN_EPS):
    mu = jnp.mean(x, axis=-1, keepdims=True)
    var = jnp.mean((x - mu) ** 2, axis=-1, keepdims=True)
    return (x - mu) * jax.lax.rsqrt(var + eps) * g + b


def _gelu(x):
    # TODO(synk): HF ELECTRA uses exact (erf) GELU; tanh approximation used here for
    # guaranteed Mosaic lowering (numerically near-identical).
    c = math.sqrt(2.0 / math.pi)
    return 0.5 * x * (1.0 + jnp.tanh(c * (x + 0.044715 * x * x * x)))


# ---------------- fused Pallas kernel ----------------

def _electra_kernel(emb_ref, mask_ref, emb_ln_ref, wp_ref, bp_ref,
                    wqkv_ref, wo_ref, bqkv_ref, bho_ref, lnp_ref,
                    w1_ref, b1_ref, w2_ref, out_ref, *, batch, seq):
    f32 = jnp.float32
    bf16 = jnp.bfloat16

    # ---- embeddings: LayerNorm(EMB) + embeddings_project (EMB -> HID) ----
    e = emb_ref[...]                                           # (N, EMB) f32
    eln = emb_ln_ref[...]                                      # (2, EMB) f32
    y = _layer_norm(e, eln[0:1, :], eln[1:2, :])
    x = jnp.dot(y.astype(bf16), wp_ref[...],
                preferred_element_type=f32) + bp_ref[...]      # (N, HID) f32

    amask = mask_ref[...]                                      # (N, N) f32 additive
    n = x.shape[0]

    for l in range(NLAYER):                                    # static layer loop
        lnp = lnp_ref[l]                                       # (4, H) f32
        bho = bho_ref[l]                                       # (2, H) f32

        # fused QKV projection (attention scale pre-folded into Wq / bq)
        qkv = jnp.dot(x.astype(bf16), wqkv_ref[l],
                      preferred_element_type=f32) + bqkv_ref[l]   # (N, 3H) f32
        qkv_b = qkv.astype(bf16)

        # multi-head attention over the full flattened (N, N) score slab with a
        # block-diagonal mask; per-head output-projection accumulation (no concat).
        attn = jnp.zeros((n, HID), f32)
        for h in range(NHEAD):                                 # static head loop
            qh = qkv_b[:, h * HEAD_DIM:(h + 1) * HEAD_DIM]
            kh = qkv_b[:, HID + h * HEAD_DIM:HID + (h + 1) * HEAD_DIM]
            vh = qkv_b[:, 2 * HID + h * HEAD_DIM:2 * HID + (h + 1) * HEAD_DIM]
            s = jax.lax.dot_general(qh, kh, (((1,), (1,)), ((), ())),
                                    preferred_element_type=f32)   # (N, N)
            s = s + amask
            s = s - jnp.max(s, axis=-1, keepdims=True)
            p = jnp.exp(s)
            p = p * pl.reciprocal(jnp.sum(p, axis=-1, keepdims=True), approx=True)
            ctx = jnp.dot(p.astype(bf16), vh,
                          preferred_element_type=f32)             # (N, D)
            attn = attn + jnp.dot(ctx.astype(bf16), wo_ref[l * NHEAD + h],
                                  preferred_element_type=f32)     # (N, H)
        attn = attn + bho[0:1, :]

        y1 = _layer_norm(x + attn, lnp[0:1, :], lnp[1:2, :])

        h1 = _gelu(jnp.dot(y1.astype(bf16), w1_ref[l],
                           preferred_element_type=f32) + b1_ref[l])   # (N, FFN)
        h2 = jnp.dot(h1.astype(bf16), w2_ref[l],
                     preferred_element_type=f32) + bho[1:2, :]        # (N, H)
        x = _layer_norm(y1 + h2, lnp[2:3, :], lnp[3:4, :])

    # CLS token (row 0 of each sequence) -- the only HBM output of the kernel.
    cls = jnp.concatenate([x[b * seq:b * seq + 1, :] for b in range(batch)], axis=0)
    out_ref[...] = cls
    # TODO(synk): nn.Dropout is identity at inference; training-mode dropout omitted.


# ---------------- wrapper ----------------

def electra_forward(pp, token_idx, attention_mask):
    B, S = token_idx.shape
    N = B * S

    # embedding gathers (word + position + token_type=0) stay in XLA.
    # TODO(synk): embedding-table gather left to XLA; no clean tiny-shape Pallas gather.
    word = jnp.take(pp["word_emb"], token_idx, axis=0)             # (B, S, E)
    pos = pp["pos_emb"][:S][None, :, :]                            # (1, S, E)
    ttype = pp["type_emb"][0][None, None, :]                       # (1, 1, E)
    emb = (word + pos + ttype).reshape(N, EMB).astype(jnp.float32)

    # block-diagonal additive attention mask over flattened rows: query i may
    # attend key j only if same batch AND attention_mask[j] == 1.
    att = attention_mask.astype(jnp.float32).reshape(N)
    key_add = (1.0 - att) * NEG_INF                                # (N,)
    bidx = jnp.arange(N, dtype=jnp.int32) // S
    same = bidx[:, None] == bidx[None, :]
    mask_full = jnp.where(same, key_add[None, :], NEG_INF).astype(jnp.float32)

    kernel = functools.partial(_electra_kernel, batch=B, seq=S)
    return pl.pallas_call(
        kernel,
        out_shape=jax.ShapeDtypeStruct((B, HID), jnp.float32),
    )(emb, mask_full, pp["emb_ln"], pp["wp"], pp["bp"],
      pp["wqkv"], pp["wo"], pp["bqkv"], pp["bho"], pp["lnp"],
      pp["w1"], pp["b1"], pp["w2"])


# ---------------- deterministic synthetic weights + packing ----------------

def init_params(key):
    keys = jax.random.split(key, 64)
    ki = iter(keys)

    def dense(shape, scale=0.02):
        return (scale * jax.random.normal(next(ki), shape)).astype(jnp.float32)

    emb = dict(
        word_emb=dense((VOCAB, EMB)),
        pos_emb=dense((MAX_POS, EMB)),
        type_emb=dense((2, EMB)),
        ln_g=jnp.ones((1, EMB), jnp.float32),
        ln_b=jnp.zeros((1, EMB), jnp.float32),
        wp=dense((EMB, HID)),
        bp=jnp.zeros((1, HID), jnp.float32),
    )
    layers = []
    for _ in range(NLAYER):
        layers.append(dict(
            wq=dense((HID, HID)), bq=jnp.zeros((1, HID), jnp.float32),
            wk=dense((HID, HID)), bk=jnp.zeros((1, HID), jnp.float32),
            wv=dense((HID, HID)), bv=jnp.zeros((1, HID), jnp.float32),
            wo=dense((HID, HID)), bo=jnp.zeros((1, HID), jnp.float32),
            ln1_g=jnp.ones((1, HID), jnp.float32), ln1_b=jnp.zeros((1, HID), jnp.float32),
            w1=dense((HID, FFN)), b1=jnp.zeros((1, FFN), jnp.float32),
            w2=dense((FFN, HID)), b2=jnp.zeros((1, HID), jnp.float32),
            ln2_g=jnp.ones((1, HID), jnp.float32), ln2_b=jnp.zeros((1, HID), jnp.float32),
        ))
    return {"embeddings": emb, "layers": layers}


def pack_params(params):
    """Pack torch-layout params into stacked, bf16 MXU-friendly kernel inputs."""
    ep = params["embeddings"]
    scale = 1.0 / math.sqrt(HEAD_DIM)
    packed = dict(
        word_emb=ep["word_emb"], pos_emb=ep["pos_emb"], type_emb=ep["type_emb"],
        emb_ln=jnp.concatenate([ep["ln_g"], ep["ln_b"]], axis=0),      # (2, E) f32
        wp=ep["wp"].astype(jnp.bfloat16),                              # (E, H) bf16
        bp=ep["bp"],                                                   # (1, H) f32
    )
    wqkv, wo, bqkv, bho, lnp, w1, b1, w2 = ([] for _ in range(8))
    for lp in params["layers"]:
        # attention scale folded into Wq and bq
        wqkv.append(jnp.concatenate([lp["wq"] * scale, lp["wk"], lp["wv"]], axis=1))
        wo.append(lp["wo"].reshape(NHEAD, HEAD_DIM, HID))              # per-head rows
        bqkv.append(jnp.concatenate([lp["bq"] * scale, lp["bk"], lp["bv"]], axis=1))
        bho.append(jnp.concatenate([lp["bo"], lp["b2"]], axis=0))
        lnp.append(jnp.concatenate([lp["ln1_g"], lp["ln1_b"],
                                    lp["ln2_g"], lp["ln2_b"]], axis=0))
        w1.append(lp["w1"]); b1.append(lp["b1"]); w2.append(lp["w2"])
    packed.update(
        wqkv=jnp.stack(wqkv).astype(jnp.bfloat16),                     # (L, H, 3H)
        wo=jnp.concatenate(wo, axis=0).astype(jnp.bfloat16),           # (L*NHEAD, D, H)
        bqkv=jnp.stack(bqkv),                                          # (L, 1, 3H) f32
        bho=jnp.stack(bho),                                            # (L, 2, H)  f32
        lnp=jnp.stack(lnp),                                            # (L, 4, H)  f32
        w1=jnp.stack(w1).astype(jnp.bfloat16),                         # (L, H, FFN)
        b1=jnp.stack(b1),                                              # (L, 1, FFN) f32
        w2=jnp.stack(w2).astype(jnp.bfloat16),                         # (L, FFN, H)
    )
    return packed


if __name__ == "__main__":
    key = jax.random.PRNGKey(0)
    pkey, ikey = jax.random.split(key)
    params = init_params(pkey)
    pp = pack_params(params)

    B, S = 2, 8
    token_idx = jax.random.randint(ikey, (B, S), 0, VOCAB, dtype=jnp.int32)
    attention_mask = jnp.array([[1, 1, 1, 1, 1, 1, 1, 1],
                                [1, 1, 1, 1, 1, 1, 0, 0]], dtype=jnp.float32)

    fwd = jax.jit(electra_forward)
    out = jax.block_until_ready(fwd(pp, token_idx, attention_mask))

    assert out.shape == (B, HID), out.shape
    assert bool(jnp.all(jnp.isfinite(out)))
    print("KERNEL_OK")
</pallas_src>

<mosaic_0001>
module attributes {stable_mosaic.version = 11 : i64} {
  func.func @_electra_kernel(%arg0: memref<16x16xf32, #tpu.memory_space<vmem>>, %arg1: memref<16x16xf32, #tpu.memory_space<vmem>>, %arg2: memref<2x16xf32, #tpu.memory_space<vmem>>, %arg3: memref<16x32xbf16, #tpu.memory_space<vmem>>, %arg4: memref<1x32xf32, #tpu.memory_space<vmem>>, %arg5: memref<2x32x96xbf16, #tpu.memory_space<vmem>>, %arg6: memref<8x8x32xbf16, #tpu.memory_space<vmem>>, %arg7: memref<2x1x96xf32, #tpu.memory_space<vmem>>, %arg8: memref<2x2x32xf32, #tpu.memory_space<vmem>>, %arg9: memref<2x4x32xf32, #tpu.memory_space<vmem>>, %arg10: memref<2x32x64xbf16, #tpu.memory_space<vmem>>, %arg11: memref<2x1x64xf32, #tpu.memory_space<vmem>>, %arg12: memref<2x64x32xbf16, #tpu.memory_space<vmem>>, %arg13: memref<2x32xf32, #tpu.memory_space<vmem>>) attributes {dimension_semantics = [], scalar_prefetch = 0 : i64, scratch_operands = 0 : i64, tpu.core_type = #tpu.core_type<tc>} {
    %c0 = arith.constant 0 : index
    %c0_0 = arith.constant 0 : index
    %0 = vector.load %arg0[%c0, %c0_0] : memref<16x16xf32, #tpu.memory_space<vmem>>, vector<16x16xf32>
    %c0_1 = arith.constant 0 : index
    %c0_2 = arith.constant 0 : index
    %1 = vector.load %arg2[%c0_1, %c0_2] : memref<2x16xf32, #tpu.memory_space<vmem>>, vector<2x16xf32>
    %2 = vector.extract_strided_slice %1 {offsets = [0, 0], sizes = [1, 16], strides = [1, 1]} : vector<2x16xf32> to vector<1x16xf32>
    %3 = vector.extract_strided_slice %1 {offsets = [1, 0], sizes = [1, 16], strides = [1, 1]} : vector<2x16xf32> to vector<1x16xf32>
    %cst = arith.constant dense<0.000000e+00> : vector<16xf32>
    %4 = vector.multi_reduction <add>, %0, %cst [1] : vector<16x16xf32> to vector<16xf32>
    %5 = vector.shape_cast %4 : vector<16xf32> to vector<16x1xf32>
    %cst_3 = arith.constant 1.600000e+01 : f32
    %6 = vector.broadcast %cst_3 : f32 to vector<16x1xf32>
    %7 = arith.divf %5, %6 : vector<16x1xf32>
    %8 = vector.broadcast %7 : vector<16x1xf32> to vector<16x16xf32>
    %9 = arith.subf %0, %8 : vector<16x16xf32>
    %10 = arith.mulf %9, %9 : vector<16x16xf32>
    %cst_4 = arith.constant dense<0.000000e+00> : vector<16xf32>
    %11 = vector.multi_reduction <add>, %10, %cst_4 [1] : vector<16x16xf32> to vector<16xf32>
    %12 = vector.shape_cast %11 : vector<16xf32> to vector<16x1xf32>
    %cst_5 = arith.constant 1.600000e+01 : f32
    %13 = vector.broadcast %cst_5 : f32 to vector<16x1xf32>
    %14 = arith.divf %12, %13 : vector<16x1xf32>
    %15 = vector.broadcast %7 : vector<16x1xf32> to vector<16x16xf32>
    %16 = arith.subf %0, %15 : vector<16x16xf32>
    %cst_6 = arith.constant 9.99999996E-13 : f32
    %17 = vector.broadcast %cst_6 : f32 to vector<16x1xf32>
    %18 = arith.addf %14, %17 : vector<16x1xf32>
    %19 = math.rsqrt %18 : vector<16x1xf32>
    %20 = vector.broadcast %19 : vector<16x1xf32> to vector<16x16xf32>
    %21 = arith.mulf %16, %20 : vector<16x16xf32>
    %22 = vector.broadcast %2 : vector<1x16xf32> to vector<16x16xf32>
    %23 = arith.mulf %21, %22 : vector<16x16xf32>
    %24 = vector.broadcast %3 : vector<1x16xf32> to vector<16x16xf32>
    %25 = arith.addf %23, %24 : vector<16x16xf32>
    %26 = arith.truncf %25 : vector<16x16xf32> to vector<16x16xbf16>
    %c0_7 = arith.constant 0 : index
    %c0_8 = arith.constant 0 : index
    %27 = vector.load %arg3[%c0_7, %c0_8] : memref<16x32xbf16, #tpu.memory_space<vmem>>, vector<16x32xbf16>
    %cst_9 = arith.constant dense<0.000000e+00> : vector<16x32xf32>
    %28 = tpu.matmul %26, %27, %cst_9 {dimension_numbers = #tpu.dot_dimension_numbers<[1], [0], [0], [1], [0, 0, 1, 1], [], []>} : vector<16x16xbf16>, vector<16x32xbf16>, vector<16x32xf32> -> vector<16x32xf32>
    %c0_10 = arith.constant 0 : index
    %c0_11 = arith.constant 0 : index
    %29 = vector.load %arg4[%c0_10, %c0_11] : memref<1x32xf32, #tpu.memory_space<vmem>>, vector<1x32xf32>
    %30 = vector.broadcast %29 : vector<1x32xf32> to vector<16x32xf32>
    %31 = arith.addf %28, %30 : vector<16x32xf32>
    %c0_12 = arith.constant 0 : index
    %c0_13 = arith.constant 0 : index
    %32 = vector.load %arg1[%c0_12, %c0_13] : memref<16x16xf32, #tpu.memory_space<vmem>>, vector<16x16xf32>
    %c0_14 = arith.constant 0 : index
    %c0_15 = arith.constant 0 : index
    %c0_16 = arith.constant 0 : index
    %33 = vector.load %arg9[%c0_14, %c0_15, %c0_16] : memref<2x4x32xf32, #tpu.memory_space<vmem>>, vector<1x4x32xf32>
    %34 = vector.shape_cast %33 : vector<1x4x32xf32> to vector<4x32xf32>
    %c0_17 = arith.constant 0 : index
    %c0_18 = arith.constant 0 : index
    %c0_19 = arith.constant 0 : index
    %35 = vector.load %arg8[%c0_17, %c0_18, %c0_19] : memref<2x2x32xf32, #tpu.memory_space<vmem>>, vector<1x2x32xf32>
    %36 = vector.shape_cast %35 : vector<1x2x32xf32> to vector<2x32xf32>
    %37 = arith.truncf %31 : vector<16x32xf32> to vector<16x32xbf16>
    %c0_20 = arith.constant 0 : index
    %c0_21 = arith.constant 0 : index
    %c0_22 = arith.constant 0 : index
    %38 = vector.load %arg5[%c0_20, %c0_21, %c0_22] : memref<2x32x96xbf16, #tpu.memory_space<vmem>>, vector<1x32x96xbf16>
    %39 = vector.shape_cast %38 : vector<1x32x96xbf16> to vector<32x96xbf16>
    %cst_23 = arith.constant dense<0.000000e+00> : vector<16x96xf32>
    %40 = tpu.matmul %37, %39, %cst_23 {dimension_numbers = #tpu.dot_dimension_numbers<[1], [0], [0], [1], [0, 0, 1, 1], [], []>} : vector<16x32xbf16>, vector<32x96xbf16>, vector<16x96xf32> -> vector<16x96xf32>
    %c0_24 = arith.constant 0 : index
    %c0_25 = arith.constant 0 : index
    %c0_26 = arith.constant 0 : index
    %41 = vector.load %arg7[%c0_24, %c0_25, %c0_26] : memref<2x1x96xf32, #tpu.memory_space<vmem>>, vector<1x1x96xf32>
    %42 = vector.shape_cast %41 : vector<1x1x96xf32> to vector<1x96xf32>
    %43 = vector.broadcast %42 : vector<1x96xf32> to vector<16x96xf32>
    %44 = arith.addf %40, %43 : vector<16x96xf32>
    %45 = arith.truncf %44 : vector<16x96xf32> to vector<16x96xbf16>
    %cst_27 = arith.constant 0.000000e+00 : f32
    %46 = vector.broadcast %cst_27 : f32 to vector<16x32xf32>
    %47 = vector.extract_strided_slice %45 {offsets = [0, 0], sizes = [16, 8], strides = [1, 1]} : vector<16x96xbf16> to vector<16x8xbf16>
    %48 = vector.extract_strided_slice %45 {offsets = [0, 32], sizes = [16, 8], strides = [1, 1]} : vector<16x96xbf16> to vector<16x8xbf16>
    %49 = vector.extract_strided_slice %45 {offsets = [0, 64], sizes = [16, 8], strides = [1, 1]} : vector<16x96xbf16> to vector<16x8xbf16>
    %cst_28 = arith.constant dense<0.000000e+00> : vector<16x16xf32>
    %50 = tpu.matmul %47, %48, %cst_28 {dimension_numbers = #tpu.dot_dimension_numbers<[1], [1], [0], [0], [0, 0, 1, 0], [], []>} : vector<16x8xbf16>, vector<16x8xbf16>, vector<16x16xf32> -> vector<16x16xf32>
    %51 = arith.addf %50, %32 : vector<16x16xf32>
    %cst_29 = arith.constant dense<0xFF800000> : vector<16xf32>
    %52 = vector.multi_reduction <maximumf>, %51, %cst_29 [1] : vector<16x16xf32> to vector<16xf32>
    %53 = vector.shape_cast %52 : vector<16xf32> to vector<16x1xf32>
    %54 = vector.broadcast %53 : vector<16x1xf32> to vector<16x16xf32>
    %55 = arith.subf %51, %54 : vector<16x16xf32>
    %56 = math.exp %55 : vector<16x16xf32>
    %cst_30 = arith.constant dense<0.000000e+00> : vector<16xf32>
    %57 = vector.multi_reduction <add>, %56, %cst_30 [1] : vector<16x16xf32> to vector<16xf32>
    %58 = vector.shape_cast %57 : vector<16xf32> to vector<16x1xf32>
    %59 = tpu.reciprocal %58 {approx = true} : vector<16x1xf32> -> vector<16x1xf32>
    %60 = vector.broadcast %59 : vector<16x1xf32> to vector<16x16xf32>
    %61 = arith.mulf %56, %60 : vector<16x16xf32>
    %62 = arith.truncf %61 : vector<16x16xf32> to vector<16x16xbf16>
    %cst_31 = arith.constant dense<0.000000e+00> : vector<16x8xf32>
    %63 = tpu.matmul %62, %49, %cst_31 {dimension_numbers = #tpu.dot_dimension_numbers<[1], [0], [0], [1], [0, 0, 1, 1], [], []>} : vector<16x16xbf16>, vector<16x8xbf16>, vector<16x8xf32> -> vector<16x8xf32>
    %64 = arith.truncf %63 : vector<16x8xf32> to vector<16x8xbf16>
    %c0_32 = arith.constant 0 : index
    %c0_33 = arith.constant 0 : index
    %c0_34 = arith.constant 0 : index
    %65 = vector.load %arg6[%c0_32, %c0_33, %c0_34] : memref<8x8x32xbf16, #tpu.memory_space<vmem>>, vector<1x8x32xbf16>
    %66 = vector.shape_cast %65 : vector<1x8x32xbf16> to vector<8x32xbf16>
    %cst_35 = arith.constant dense<0.000000e+00> : vector<16x32xf32>
    %67 = tpu.matmul %64, %66, %cst_35 {dimension_numbers = #tpu.dot_dimension_numbers<[1], [0], [0], [1], [0, 0, 1, 1], [], []>} : vector<16x8xbf16>, vector<8x32xbf16>, vector<16x32xf32> -> vector<16x32xf32>
    %68 = arith.addf %46, %67 : vector<16x32xf32>
    %69 = vector.extract_strided_slice %45 {offsets = [0, 8], sizes = [16, 8], strides = [1, 1]} : vector<16x96xbf16> to vector<16x8xbf16>
    %70 = vector.extract_strided_slice %45 {offsets = [0, 40], sizes = [16, 8], strides = [1, 1]} : vector<16x96xbf16> to vector<16x8xbf16>
    %71 = vector.extract_strided_slice %45 {offsets = [0, 72], sizes = [16, 8], strides = [1, 1]} : vector<16x96xbf16> to vector<16x8xbf16>
    %cst_36 = arith.constant dense<0.000000e+00> : vector<16x16xf32>
    %72 = tpu.matmul %69, %70, %cst_36 {dimension_numbers = #tpu.dot_dimension_numbers<[1], [1], [0], [0], [0, 0, 1, 0], [], []>} : vector<16x8xbf16>, vector<16x8xbf16>, vector<16x16xf32> -> vector<16x16xf32>
    %73 = arith.addf %72, %32 : vector<16x16xf32>
    %cst_37 = arith.constant dense<0xFF800000> : vector<16xf32>
    %74 = vector.multi_reduction <maximumf>, %73, %cst_37 [1] : vector<16x16xf32> to vector<16xf32>
    %75 = vector.shape_cast %74 : vector<16xf32> to vector<16x1xf32>
    %76 = vector.broadcast %75 : vector<16x1xf32> to vector<16x16xf32>
    %77 = arith.subf %73, %76 : vector<16x16xf32>
    %78 = math.exp %77 : vector<16x16xf32>
    %cst_38 = arith.constant dense<0.000000e+00> : vector<16xf32>
    %79 = vector.multi_reduction <add>, %78, %cst_38 [1] : vector<16x16xf32> to vector<16xf32>
    %80 = vector.shape_cast %79 : vector<16xf32> to vector<16x1xf32>
    %81 = tpu.reciprocal %80 {approx = true} : vector<16x1xf32> -> vector<16x1xf32>
    %82 = vector.broadcast %81 : vector<16x1xf32> to vector<16x16xf32>
    %83 = arith.mulf %78, %82 : vector<16x16xf32>
    %84 = arith.truncf %83 : vector<16x16xf32> to vector<16x16xbf16>
    %cst_39 = arith.constant dense<0.000000e+00> : vector<16x8xf32>
    %85 = tpu.matmul %84, %71, %cst_39 {dimension_numbers = #tpu.dot_dimension_numbers<[1], [0], [0], [1], [0, 0, 1, 1], [], []>} : vector<16x16xbf16>, vector<16x8xbf16>, vector<16x8xf32> -> vector<16x8xf32>
    %86 = arith.truncf %85 : vector<16x8xf32> to vector<16x8xbf16>
    %c1 = arith.constant 1 : index
    %c0_40 = arith.constant 0 : index
    %c0_41 = arith.constant 0 : index
    %87 = vector.load %arg6[%c1, %c0_40, %c0_41] : memref<8x8x32xbf16, #tpu.memory_space<vmem>>, vector<1x8x32xbf16>
    %88 = vector.shape_cast %87 : vector<1x8x32xbf16> to vector<8x32xbf16>
    %cst_42 = arith.constant dense<0.000000e+00> : vector<16x32xf32>
    %89 = tpu.matmul %86, %88, %cst_42 {dimension_numbers = #tpu.dot_dimension_numbers<[1], [0], [0], [1], [0, 0, 1, 1], [], []>} : vector<16x8xbf16>, vector<8x32xbf16>, vector<16x32xf32> -> vector<16x32xf32>
    %90 = arith.addf %68, %89 : vector<16x32xf32>
    %91 = vector.extract_strided_slice %45 {offsets = [0, 16], sizes = [16, 8], strides = [1, 1]} : vector<16x96xbf16> to vector<16x8xbf16>
    %92 = vector.extract_strided_slice %45 {offsets = [0, 48], sizes = [16, 8], strides = [1, 1]} : vector<16x96xbf16> to vector<16x8xbf16>
    %93 = vector.extract_strided_slice %45 {offsets = [0, 80], sizes = [16, 8], strides = [1, 1]} : vector<16x96xbf16> to vector<16x8xbf16>
    %cst_43 = arith.constant dense<0.000000e+00> : vector<16x16xf32>
    %94 = tpu.matmul %91, %92, %cst_43 {dimension_numbers = #tpu.dot_dimension_numbers<[1], [1], [0], [0], [0, 0, 1, 0], [], []>} : vector<16x8xbf16>, vector<16x8xbf16>, vector<16x16xf32> -> vector<16x16xf32>
    %95 = arith.addf %94, %32 : vector<16x16xf32>
    %cst_44 = arith.constant dense<0xFF800000> : vector<16xf32>
    %96 = vector.multi_reduction <maximumf>, %95, %cst_44 [1] : vector<16x16xf32> to vector<16xf32>
    %97 = vector.shape_cast %96 : vector<16xf32> to vector<16x1xf32>
    %98 = vector.broadcast %97 : vector<16x1xf32> to vector<16x16xf32>
    %99 = arith.subf %95, %98 : vector<16x16xf32>
    %100 = math.exp %99 : vector<16x16xf32>
    %cst_45 = arith.constant dense<0.000000e+00> : vector<16xf32>
    %101 = vector.multi_reduction <add>, %100, %cst_45 [1] : vector<16x16xf32> to vector<16xf32>
    %102 = vector.shape_cast %101 : vector<16xf32> to vector<16x1xf32>
    %103 = tpu.reciprocal %102 {approx = true} : vector<16x1xf32> -> vector<16x1xf32>
    %104 = vector.broadcast %103 : vector<16x1xf32> to vector<16x16xf32>
    %105 = arith.mulf %100, %104 : vector<16x16xf32>
    %106 = arith.truncf %105 : vector<16x16xf32> to vector<16x16xbf16>
    %cst_46 = arith.constant dense<0.000000e+00> : vector<16x8xf32>
    %107 = tpu.matmul %106, %93, %cst_46 {dimension_numbers = #tpu.dot_dimension_numbers<[1], [0], [0], [1], [0, 0, 1, 1], [], []>} : vector<16x16xbf16>, vector<16x8xbf16>, vector<16x8xf32> -> vector<16x8xf32>
    %108 = arith.truncf %107 : vector<16x8xf32> to vector<16x8xbf16>
    %c2 = arith.constant 2 : index
    %c0_47 = arith.constant 0 : index
    %c0_48 = arith.constant 0 : index
    %109 = vector.load %arg6[%c2, %c0_47, %c0_48] : memref<8x8x32xbf16, #tpu.memory_space<vmem>>, vector<1x8x32xbf16>
    %110 = vector.shape_cast %109 : vector<1x8x32xbf16> to vector<8x32xbf16>
    %cst_49 = arith.constant dense<0.000000e+00> : vector<16x32xf32>
    %111 = tpu.matmul %108, %110, %cst_49 {dimension_numbers = #tpu.dot_dimension_numbers<[1], [0], [0], [1], [0, 0, 1, 1], [], []>} : vector<16x8xbf16>, vector<8x32xbf16>, vector<16x32xf32> -> vector<16x32xf32>
    %112 = arith.addf %90, %111 : vector<16x32xf32>
    %113 = vector.extract_strided_slice %45 {offsets = [0, 24], sizes = [16, 8], strides = [1, 1]} : vector<16x96xbf16> to vector<16x8xbf16>
    %114 = vector.extract_strided_slice %45 {offsets = [0, 56], sizes = [16, 8], strides = [1, 1]} : vector<16x96xbf16> to vector<16x8xbf16>
    %115 = vector.extract_strided_slice %45 {offsets = [0, 88], sizes = [16, 8], strides = [1, 1]} : vector<16x96xbf16> to vector<16x8xbf16>
    %cst_50 = arith.constant dense<0.000000e+00> : vector<16x16xf32>
    %116 = tpu.matmul %113, %114, %cst_50 {dimension_numbers = #tpu.dot_dimension_numbers<[1], [1], [0], [0], [0, 0, 1, 0], [], []>} : vector<16x8xbf16>, vector<16x8xbf16>, vector<16x16xf32> -> vector<16x16xf32>
    %117 = arith.addf %116, %32 : vector<16x16xf32>
    %cst_51 = arith.constant dense<0xFF800000> : vector<16xf32>
    %118 = vector.multi_reduction <maximumf>, %117, %cst_51 [1] : vector<16x16xf32> to vector<16xf32>
    %119 = vector.shape_cast %118 : vector<16xf32> to vector<16x1xf32>
    %120 = vector.broadcast %119 : vector<16x1xf32> to vector<16x16xf32>
    %121 = arith.subf %117, %120 : vector<16x16xf32>
    %122 = math.exp %121 : vector<16x16xf32>
    %cst_52 = arith.constant dense<0.000000e+00> : vector<16xf32>
    %123 = vector.multi_reduction <add>, %122, %cst_52 [1] : vector<16x16xf32> to vector<16xf32>
    %124 = vector.shape_cast %123 : vector<16xf32> to vector<16x1xf32>
    %125 = tpu.reciprocal %124 {approx = true} : vector<16x1xf32> -> vector<16x1xf32>
    %126 = vector.broadcast %125 : vector<16x1xf32> to vector<16x16xf32>
    %127 = arith.mulf %122, %126 : vector<16x16xf32>
    %128 = arith.truncf %127 : vector<16x16xf32> to vector<16x16xbf16>
    %cst_53 = arith.constant dense<0.000000e+00> : vector<16x8xf32>
    %129 = tpu.matmul %128, %115, %cst_53 {dimension_numbers = #tpu.dot_dimension_numbers<[1], [0], [0], [1], [0, 0, 1, 1], [], []>} : vector<16x16xbf16>, vector<16x8xbf16>, vector<16x8xf32> -> vector<16x8xf32>
    %130 = arith.truncf %129 : vector<16x8xf32> to vector<16x8xbf16>
    %c3 = arith.constant 3 : index
    %c0_54 = arith.constant 0 : index
    %c0_55 = arith.constant 0 : index
    %131 = vector.load %arg6[%c3, %c0_54, %c0_55] : memref<8x8x32xbf16, #tpu.memory_space<vmem>>, vector<1x8x32xbf16>
    %132 = vector.shape_cast %131 : vector<1x8x32xbf16> to vector<8x32xbf16>
    %cst_56 = arith.constant dense<0.000000e+00> : vector<16x32xf32>
    %133 = tpu.matmul %130, %132, %cst_56 {dimension_numbers = #tpu.dot_dimension_numbers<[1], [0], [0], [1], [0, 0, 1, 1], [], []>} : vector<16x8xbf16>, vector<8x32xbf16>, vector<16x32xf32> -> vector<16x32xf32>
    %134 = arith.addf %112, %133 : vector<16x32xf32>
    %135 = vector.extract_strided_slice %36 {offsets = [0, 0], sizes = [1, 32], strides = [1, 1]} : vector<2x32xf32> to vector<1x32xf32>
    %136 = vector.broadcast %135 : vector<1x32xf32> to vector<16x32xf32>
    %137 = arith.addf %134, %136 : vector<16x32xf32>
    %138 = arith.addf %31, %137 : vector<16x32xf32>
    %139 = vector.extract_strided_slice %34 {offsets = [0, 0], sizes = [1, 32], strides = [1, 1]} : vector<4x32xf32> to vector<1x32xf32>
    %140 = vector.extract_strided_slice %34 {offsets = [1, 0], sizes = [1, 32], strides = [1, 1]} : vector<4x32xf32> to vector<1x32xf32>
    %cst_57 = arith.constant dense<0.000000e+00> : vector<16xf32>
    %141 = vector.multi_reduction <add>, %138, %cst_57 [1] : vector<16x32xf32> to vector<16xf32>
    %142 = vector.shape_cast %141 : vector<16xf32> to vector<16x1xf32>
    %cst_58 = arith.constant 3.200000e+01 : f32
    %143 = vector.broadcast %cst_58 : f32 to vector<16x1xf32>
    %144 = arith.divf %142, %143 : vector<16x1xf32>
    %145 = vector.broadcast %144 : vector<16x1xf32> to vector<16x32xf32>
    %146 = arith.subf %138, %145 : vector<16x32xf32>
    %147 = arith.mulf %146, %146 : vector<16x32xf32>
    %cst_59 = arith.constant dense<0.000000e+00> : vector<16xf32>
    %148 = vector.multi_reduction <add>, %147, %cst_59 [1] : vector<16x32xf32> to vector<16xf32>
    %149 = vector.shape_cast %148 : vector<16xf32> to vector<16x1xf32>
    %cst_60 = arith.constant 3.200000e+01 : f32
    %150 = vector.broadcast %cst_60 : f32 to vector<16x1xf32>
    %151 = arith.divf %149, %150 : vector<16x1xf32>
    %152 = vector.broadcast %144 : vector<16x1xf32> to vector<16x32xf32>
    %153 = arith.subf %138, %152 : vector<16x32xf32>
    %cst_61 = arith.constant 9.99999996E-13 : f32
    %154 = vector.broadcast %cst_61 : f32 to vector<16x1xf32>
    %155 = arith.addf %151, %154 : vector<16x1xf32>
    %156 = math.rsqrt %155 : vector<16x1xf32>
    %157 = vector.broadcast %156 : vector<16x1xf32> to vector<16x32xf32>
    %158 = arith.mulf %153, %157 : vector<16x32xf32>
    %159 = vector.broadcast %139 : vector<1x32xf32> to vector<16x32xf32>
    %160 = arith.mulf %158, %159 : vector<16x32xf32>
    %161 = vector.broadcast %140 : vector<1x32xf32> to vector<16x32xf32>
    %162 = arith.addf %160, %161 : vector<16x32xf32>
    %163 = arith.truncf %162 : vector<16x32xf32> to vector<16x32xbf16>
    %c0_62 = arith.constant 0 : index
    %c0_63 = arith.constant 0 : index
    %c0_64 = arith.constant 0 : index
    %164 = vector.load %arg10[%c0_62, %c0_63, %c0_64] : memref<2x32x64xbf16, #tpu.memory_space<vmem>>, vector<1x32x64xbf16>
    %165 = vector.shape_cast %164 : vector<1x32x64xbf16> to vector<32x64xbf16>
    %cst_65 = arith.constant dense<0.000000e+00> : vector<16x64xf32>
    %166 = tpu.matmul %163, %165, %cst_65 {dimension_numbers = #tpu.dot_dimension_numbers<[1], [0], [0], [1], [0, 0, 1, 1], [], []>} : vector<16x32xbf16>, vector<32x64xbf16>, vector<16x64xf32> -> vector<16x64xf32>
    %c0_66 = arith.constant 0 : index
    %c0_67 = arith.constant 0 : index
    %c0_68 = arith.constant 0 : index
    %167 = vector.load %arg11[%c0_66, %c0_67, %c0_68] : memref<2x1x64xf32, #tpu.memory_space<vmem>>, vector<1x1x64xf32>
    %168 = vector.shape_cast %167 : vector<1x1x64xf32> to vector<1x64xf32>
    %169 = vector.broadcast %168 : vector<1x64xf32> to vector<16x64xf32>
    %170 = arith.addf %166, %169 : vector<16x64xf32>
    %cst_69 = arith.constant 5.000000e-01 : f32
    %171 = vector.broadcast %cst_69 : f32 to vector<16x64xf32>
    %172 = arith.mulf %171, %170 : vector<16x64xf32>
    %cst_70 = arith.constant 4.471500e-02 : f32
    %173 = vector.broadcast %cst_70 : f32 to vector<16x64xf32>
    %174 = arith.mulf %173, %170 : vector<16x64xf32>
    %175 = arith.mulf %174, %170 : vector<16x64xf32>
    %176 = arith.mulf %175, %170 : vector<16x64xf32>
    %177 = arith.addf %170, %176 : vector<16x64xf32>
    %cst_71 = arith.constant 0.797884583 : f32
    %178 = vector.broadcast %cst_71 : f32 to vector<16x64xf32>
    %179 = arith.mulf %178, %177 : vector<16x64xf32>
    %180 = math.tanh %179 : vector<16x64xf32>
    %cst_72 = arith.constant 1.000000e+00 : f32
    %181 = vector.broadcast %cst_72 : f32 to vector<16x64xf32>
    %182 = arith.addf %181, %180 : vector<16x64xf32>
    %183 = arith.mulf %172, %182 : vector<16x64xf32>
    %184 = arith.truncf %183 : vector<16x64xf32> to vector<16x64xbf16>
    %c0_73 = arith.constant 0 : index
    %c0_74 = arith.constant 0 : index
    %c0_75 = arith.constant 0 : index
    %185 = vector.load %arg12[%c0_73, %c0_74, %c0_75] : memref<2x64x32xbf16, #tpu.memory_space<vmem>>, vector<1x64x32xbf16>
    %186 = vector.shape_cast %185 : vector<1x64x32xbf16> to vector<64x32xbf16>
    %cst_76 = arith.constant dense<0.000000e+00> : vector<16x32xf32>
    %187 = tpu.matmul %184, %186, %cst_76 {dimension_numbers = #tpu.dot_dimension_numbers<[1], [0], [0], [1], [0, 0, 1, 1], [], []>} : vector<16x64xbf16>, vector<64x32xbf16>, vector<16x32xf32> -> vector<16x32xf32>
    %188 = vector.extract_strided_slice %36 {offsets = [1, 0], sizes = [1, 32], strides = [1, 1]} : vector<2x32xf32> to vector<1x32xf32>
    %189 = vector.broadcast %188 : vector<1x32xf32> to vector<16x32xf32>
    %190 = arith.addf %187, %189 : vector<16x32xf32>
    %191 = arith.addf %162, %190 : vector<16x32xf32>
    %192 = vector.extract_strided_slice %34 {offsets = [2, 0], sizes = [1, 32], strides = [1, 1]} : vector<4x32xf32> to vector<1x32xf32>
    %193 = vector.extract_strided_slice %34 {offsets = [3, 0], sizes = [1, 32], strides = [1, 1]} : vector<4x32xf32> to vector<1x32xf32>
    %cst_77 = arith.constant dense<0.000000e+00> : vector<16xf32>
    %194 = vector.multi_reduction <add>, %191, %cst_77 [1] : vector<16x32xf32> to vector<16xf32>
    %195 = vector.shape_cast %194 : vector<16xf32> to vector<16x1xf32>
    %cst_78 = arith.constant 3.200000e+01 : f32
    %196 = vector.broadcast %cst_78 : f32 to vector<16x1xf32>
    %197 = arith.divf %195, %196 : vector<16x1xf32>
    %198 = vector.broadcast %197 : vector<16x1xf32> to vector<16x32xf32>
    %199 = arith.subf %191, %198 : vector<16x32xf32>
    %200 = arith.mulf %199, %199 : vector<16x32xf32>
    %cst_79 = arith.constant dense<0.000000e+00> : vector<16xf32>
    %201 = vector.multi_reduction <add>, %200, %cst_79 [1] : vector<16x32xf32> to vector<16xf32>
    %202 = vector.shape_cast %201 : vector<16xf32> to vector<16x1xf32>
    %cst_80 = arith.constant 3.200000e+01 : f32
    %203 = vector.broadcast %cst_80 : f32 to vector<16x1xf32>
    %204 = arith.divf %202, %203 : vector<16x1xf32>
    %205 = vector.broadcast %197 : vector<16x1xf32> to vector<16x32xf32>
    %206 = arith.subf %191, %205 : vector<16x32xf32>
    %cst_81 = arith.constant 9.99999996E-13 : f32
    %207 = vector.broadcast %cst_81 : f32 to vector<16x1xf32>
    %208 = arith.addf %204, %207 : vector<16x1xf32>
    %209 = math.rsqrt %208 : vector<16x1xf32>
    %210 = vector.broadcast %209 : vector<16x1xf32> to vector<16x32xf32>
    %211 = arith.mulf %206, %210 : vector<16x32xf32>
    %212 = vector.broadcast %192 : vector<1x32xf32> to vector<16x32xf32>
    %213 = arith.mulf %211, %212 : vector<16x32xf32>
    %214 = vector.broadcast %193 : vector<1x32xf32> to vector<16x32xf32>
    %215 = arith.addf %213, %214 : vector<16x32xf32>
    %c1_82 = arith.constant 1 : index
    %c0_83 = arith.constant 0 : index
    %c0_84 = arith.constant 0 : index
    %216 = vector.load %arg9[%c1_82, %c0_83, %c0_84] : memref<2x4x32xf32, #tpu.memory_space<vmem>>, vector<1x4x32xf32>
    %217 = vector.shape_cast %216 : vector<1x4x32xf32> to vector<4x32xf32>
    %c1_85 = arith.constant 1 : index
    %c0_86 = arith.constant 0 : index
    %c0_87 = arith.constant 0 : index
    %218 = vector.load %arg8[%c1_85, %c0_86, %c0_87] : memref<2x2x32xf32, #tpu.memory_space<vmem>>, vector<1x2x32xf32>
    %219 = vector.shape_cast %218 : vector<1x2x32xf32> to vector<2x32xf32>
    %220 = arith.truncf %215 : vector<16x32xf32> to vector<16x32xbf16>
    %c1_88 = arith.constant 1 : index
    %c0_89 = arith.constant 0 : index
    %c0_90 = arith.constant 0 : index
    %221 = vector.load %arg5[%c1_88, %c0_89, %c0_90] : memref<2x32x96xbf16, #tpu.memory_space<vmem>>, vector<1x32x96xbf16>
    %222 = vector.shape_cast %221 : vector<1x32x96xbf16> to vector<32x96xbf16>
    %cst_91 = arith.constant dense<0.000000e+00> : vector<16x96xf32>
    %223 = tpu.matmul %220, %222, %cst_91 {dimension_numbers = #tpu.dot_dimension_numbers<[1], [0], [0], [1], [0, 0, 1, 1], [], []>} : vector<16x32xbf16>, vector<32x96xbf16>, vector<16x96xf32> -> vector<16x96xf32>
    %c1_92 = arith.constant 1 : index
    %c0_93 = arith.constant 0 : index
    %c0_94 = arith.constant 0 : index
    %224 = vector.load %arg7[%c1_92, %c0_93, %c0_94] : memref<2x1x96xf32, #tpu.memory_space<vmem>>, vector<1x1x96xf32>
    %225 = vector.shape_cast %224 : vector<1x1x96xf32> to vector<1x96xf32>
    %226 = vector.broadcast %225 : vector<1x96xf32> to vector<16x96xf32>
    %227 = arith.addf %223, %226 : vector<16x96xf32>
    %228 = arith.truncf %227 : vector<16x96xf32> to vector<16x96xbf16>
    %cst_95 = arith.constant 0.000000e+00 : f32
    %229 = vector.broadcast %cst_95 : f32 to vector<16x32xf32>
    %230 = vector.extract_strided_slice %228 {offsets = [0, 0], sizes = [16, 8], strides = [1, 1]} : vector<16x96xbf16> to vector<16x8xbf16>
    %231 = vector.extract_strided_slice %228 {offsets = [0, 32], sizes = [16, 8], strides = [1, 1]} : vector<16x96xbf16> to vector<16x8xbf16>
    %232 = vector.extract_strided_slice %228 {offsets = [0, 64], sizes = [16, 8], strides = [1, 1]} : vector<16x96xbf16> to vector<16x8xbf16>
    %cst_96 = arith.constant dense<0.000000e+00> : vector<16x16xf32>
    %233 = tpu.matmul %230, %231, %cst_96 {dimension_numbers = #tpu.dot_dimension_numbers<[1], [1], [0], [0], [0, 0, 1, 0], [], []>} : vector<16x8xbf16>, vector<16x8xbf16>, vector<16x16xf32> -> vector<16x16xf32>
    %234 = arith.addf %233, %32 : vector<16x16xf32>
    %cst_97 = arith.constant dense<0xFF800000> : vector<16xf32>
    %235 = vector.multi_reduction <maximumf>, %234, %cst_97 [1] : vector<16x16xf32> to vector<16xf32>
    %236 = vector.shape_cast %235 : vector<16xf32> to vector<16x1xf32>
    %237 = vector.broadcast %236 : vector<16x1xf32> to vector<16x16xf32>
    %238 = arith.subf %234, %237 : vector<16x16xf32>
    %239 = math.exp %238 : vector<16x16xf32>
    %cst_98 = arith.constant dense<0.000000e+00> : vector<16xf32>
    %240 = vector.multi_reduction <add>, %239, %cst_98 [1] : vector<16x16xf32> to vector<16xf32>
    %241 = vector.shape_cast %240 : vector<16xf32> to vector<16x1xf32>
    %242 = tpu.reciprocal %241 {approx = true} : vector<16x1xf32> -> vector<16x1xf32>
    %243 = vector.broadcast %242 : vector<16x1xf32> to vector<16x16xf32>
    %244 = arith.mulf %239, %243 : vector<16x16xf32>
    %245 = arith.truncf %244 : vector<16x16xf32> to vector<16x16xbf16>
    %cst_99 = arith.constant dense<0.000000e+00> : vector<16x8xf32>
    %246 = tpu.matmul %245, %232, %cst_99 {dimension_numbers = #tpu.dot_dimension_numbers<[1], [0], [0], [1], [0, 0, 1, 1], [], []>} : vector<16x16xbf16>, vector<16x8xbf16>, vector<16x8xf32> -> vector<16x8xf32>
    %247 = arith.truncf %246 : vector<16x8xf32> to vector<16x8xbf16>
    %c4 = arith.constant 4 : index
    %c0_100 = arith.constant 0 : index
    %c0_101 = arith.constant 0 : index
    %248 = vector.load %arg6[%c4, %c0_100, %c0_101] : memref<8x8x32xbf16, #tpu.memory_space<vmem>>, vector<1x8x32xbf16>
    %249 = vector.shape_cast %248 : vector<1x8x32xbf16> to vector<8x32xbf16>
    %cst_102 = arith.constant dense<0.000000e+00> : vector<16x32xf32>
    %250 = tpu.matmul %247, %249, %cst_102 {dimension_numbers = #tpu.dot_dimension_numbers<[1], [0], [0], [1], [0, 0, 1, 1], [], []>} : vector<16x8xbf16>, vector<8x32xbf16>, vector<16x32xf32> -> vector<16x32xf32>
    %251 = arith.addf %229, %250 : vector<16x32xf32>
    %252 = vector.extract_strided_slice %228 {offsets = [0, 8], sizes = [16, 8], strides = [1, 1]} : vector<16x96xbf16> to vector<16x8xbf16>
    %253 = vector.extract_strided_slice %228 {offsets = [0, 40], sizes = [16, 8], strides = [1, 1]} : vector<16x96xbf16> to vector<16x8xbf16>
    %254 = vector.extract_strided_slice %228 {offsets = [0, 72], sizes = [16, 8], strides = [1, 1]} : vector<16x96xbf16> to vector<16x8xbf16>
    %cst_103 = arith.constant dense<0.000000e+00> : vector<16x16xf32>
    %255 = tpu.matmul %252, %253, %cst_103 {dimension_numbers = #tpu.dot_dimension_numbers<[1], [1], [0], [0], [0, 0, 1, 0], [], []>} : vector<16x8xbf16>, vector<16x8xbf16>, vector<16x16xf32> -> vector<16x16xf32>
    %256 = arith.addf %255, %32 : vector<16x16xf32>
    %cst_104 = arith.constant dense<0xFF800000> : vector<16xf32>
    %257 = vector.multi_reduction <maximumf>, %256, %cst_104 [1] : vector<16x16xf32> to vector<16xf32>
    %258 = vector.shape_cast %257 : vector<16xf32> to vector<16x1xf32>
    %259 = vector.broadcast %258 : vector<16x1xf32> to vector<16x16xf32>
    %260 = arith.subf %256, %259 : vector<16x16xf32>
    %261 = math.exp %260 : vector<16x16xf32>
    %cst_105 = arith.constant dense<0.000000e+00> : vector<16xf32>
    %262 = vector.multi_reduction <add>, %261, %cst_105 [1] : vector<16x16xf32> to vector<16xf32>
    %263 = vector.shape_cast %262 : vector<16xf32> to vector<16x1xf32>
    %264 = tpu.reciprocal %263 {approx = true} : vector<16x1xf32> -> vector<16x1xf32>
    %265 = vector.broadcast %264 : vector<16x1xf32> to vector<16x16xf32>
    %266 = arith.mulf %261, %265 : vector<16x16xf32>
    %267 = arith.truncf %266 : vector<16x16xf32> to vector<16x16xbf16>
    %cst_106 = arith.constant dense<0.000000e+00> : vector<16x8xf32>
    %268 = tpu.matmul %267, %254, %cst_106 {dimension_numbers = #tpu.dot_dimension_numbers<[1], [0], [0], [1], [0, 0, 1, 1], [], []>} : vector<16x16xbf16>, vector<16x8xbf16>, vector<16x8xf32> -> vector<16x8xf32>
    %269 = arith.truncf %268 : vector<16x8xf32> to vector<16x8xbf16>
    %c5 = arith.constant 5 : index
    %c0_107 = arith.constant 0 : index
    %c0_108 = arith.constant 0 : index
    %270 = vector.load %arg6[%c5, %c0_107, %c0_108] : memref<8x8x32xbf16, #tpu.memory_space<vmem>>, vector<1x8x32xbf16>
    %271 = vector.shape_cast %270 : vector<1x8x32xbf16> to vector<8x32xbf16>
    %cst_109 = arith.constant dense<0.000000e+00> : vector<16x32xf32>
    %272 = tpu.matmul %269, %271, %cst_109 {dimension_numbers = #tpu.dot_dimension_numbers<[1], [0], [0], [1], [0, 0, 1, 1], [], []>} : vector<16x8xbf16>, vector<8x32xbf16>, vector<16x32xf32> -> vector<16x32xf32>
    %273 = arith.addf %251, %272 : vector<16x32xf32>
    %274 = vector.extract_strided_slice %228 {offsets = [0, 16], sizes = [16, 8], strides = [1, 1]} : vector<16x96xbf16> to vector<16x8xbf16>
    %275 = vector.extract_strided_slice %228 {offsets = [0, 48], sizes = [16, 8], strides = [1, 1]} : vector<16x96xbf16> to vector<16x8xbf16>
    %276 = vector.extract_strided_slice %228 {offsets = [0, 80], sizes = [16, 8], strides = [1, 1]} : vector<16x96xbf16> to vector<16x8xbf16>
    %cst_110 = arith.constant dense<0.000000e+00> : vector<16x16xf32>
    %277 = tpu.matmul %274, %275, %cst_110 {dimension_numbers = #tpu.dot_dimension_numbers<[1], [1], [0], [0], [0, 0, 1, 0], [], []>} : vector<16x8xbf16>, vector<16x8xbf16>, vector<16x16xf32> -> vector<16x16xf32>
    %278 = arith.addf %277, %32 : vector<16x16xf32>
    %cst_111 = arith.constant dense<0xFF800000> : vector<16xf32>
    %279 = vector.multi_reduction <maximumf>, %278, %cst_111 [1] : vector<16x16xf32> to vector<16xf32>
    %280 = vector.shape_cast %279 : vector<16xf32> to vector<16x1xf32>
    %281 = vector.broadcast %280 : vector<16x1xf32> to vector<16x16xf32>
    %282 = arith.subf %278, %281 : vector<16x16xf32>
    %283 = math.exp %282 : vector<16x16xf32>
    %cst_112 = arith.constant dense<0.000000e+00> : vector<16xf32>
    %284 = vector.multi_reduction <add>, %283, %cst_112 [1] : vector<16x16xf32> to vector<16xf32>
    %285 = vector.shape_cast %284 : vector<16xf32> to vector<16x1xf32>
    %286 = tpu.reciprocal %285 {approx = true} : vector<16x1xf32> -> vector<16x1xf32>
    %287 = vector.broadcast %286 : vector<16x1xf32> to vector<16x16xf32>
    %288 = arith.mulf %283, %287 : vector<16x16xf32>
    %289 = arith.truncf %288 : vector<16x16xf32> to vector<16x16xbf16>
    %cst_113 = arith.constant dense<0.000000e+00> : vector<16x8xf32>
    %290 = tpu.matmul %289, %276, %cst_113 {dimension_numbers = #tpu.dot_dimension_numbers<[1], [0], [0], [1], [0, 0, 1, 1], [], []>} : vector<16x16xbf16>, vector<16x8xbf16>, vector<16x8xf32> -> vector<16x8xf32>
    %291 = arith.truncf %290 : vector<16x8xf32> to vector<16x8xbf16>
    %c6 = arith.constant 6 : index
    %c0_114 = arith.constant 0 : index
    %c0_115 = arith.constant 0 : index
    %292 = vector.load %arg6[%c6, %c0_114, %c0_115] : memref<8x8x32xbf16, #tpu.memory_space<vmem>>, vector<1x8x32xbf16>
    %293 = vector.shape_cast %292 : vector<1x8x32xbf16> to vector<8x32xbf16>
    %cst_116 = arith.constant dense<0.000000e+00> : vector<16x32xf32>
    %294 = tpu.matmul %291, %293, %cst_116 {dimension_numbers = #tpu.dot_dimension_numbers<[1], [0], [0], [1], [0, 0, 1, 1], [], []>} : vector<16x8xbf16>, vector<8x32xbf16>, vector<16x32xf32> -> vector<16x32xf32>
    %295 = arith.addf %273, %294 : vector<16x32xf32>
    %296 = vector.extract_strided_slice %228 {offsets = [0, 24], sizes = [16, 8], strides = [1, 1]} : vector<16x96xbf16> to vector<16x8xbf16>
    %297 = vector.extract_strided_slice %228 {offsets = [0, 56], sizes = [16, 8], strides = [1, 1]} : vector<16x96xbf16> to vector<16x8xbf16>
    %298 = vector.extract_strided_slice %228 {offsets = [0, 88], sizes = [16, 8], strides = [1, 1]} : vector<16x96xbf16> to vector<16x8xbf16>
    %cst_117 = arith.constant dense<0.000000e+00> : vector<16x16xf32>
    %299 = tpu.matmul %296, %297, %cst_117 {dimension_numbers = #tpu.dot_dimension_numbers<[1], [1], [0], [0], [0, 0, 1, 0], [], []>} : vector<16x8xbf16>, vector<16x8xbf16>, vector<16x16xf32> -> vector<16x16xf32>
    %300 = arith.addf %299, %32 : vector<16x16xf32>
    %cst_118 = arith.constant dense<0xFF800000> : vector<16xf32>
    %301 = vector.multi_reduction <maximumf>, %300, %cst_118 [1] : vector<16x16xf32> to vector<16xf32>
    %302 = vector.shape_cast %301 : vector<16xf32> to vector<16x1xf32>
    %303 = vector.broadcast %302 : vector<16x1xf32> to vector<16x16xf32>
    %304 = arith.subf %300, %303 : vector<16x16xf32>
    %305 = math.exp %304 : vector<16x16xf32>
    %cst_119 = arith.constant dense<0.000000e+00> : vector<16xf32>
    %306 = vector.multi_reduction <add>, %305, %cst_119 [1] : vector<16x16xf32> to vector<16xf32>
    %307 = vector.shape_cast %306 : vector<16xf32> to vector<16x1xf32>
    %308 = tpu.reciprocal %307 {approx = true} : vector<16x1xf32> -> vector<16x1xf32>
    %309 = vector.broadcast %308 : vector<16x1xf32> to vector<16x16xf32>
    %310 = arith.mulf %305, %309 : vector<16x16xf32>
    %311 = arith.truncf %310 : vector<16x16xf32> to vector<16x16xbf16>
    %cst_120 = arith.constant dense<0.000000e+00> : vector<16x8xf32>
    %312 = tpu.matmul %311, %298, %cst_120 {dimension_numbers = #tpu.dot_dimension_numbers<[1], [0], [0], [1], [0, 0, 1, 1], [], []>} : vector<16x16xbf16>, vector<16x8xbf16>, vector<16x8xf32> -> vector<16x8xf32>
    %313 = arith.truncf %312 : vector<16x8xf32> to vector<16x8xbf16>
    %c7 = arith.constant 7 : index
    %c0_121 = arith.constant 0 : index
    %c0_122 = arith.constant 0 : index
    %314 = vector.load %arg6[%c7, %c0_121, %c0_122] : memref<8x8x32xbf16, #tpu.memory_space<vmem>>, vector<1x8x32xbf16>
    %315 = vector.shape_cast %314 : vector<1x8x32xbf16> to vector<8x32xbf16>
    %cst_123 = arith.constant dense<0.000000e+00> : vector<16x32xf32>
    %316 = tpu.matmul %313, %315, %cst_123 {dimension_numbers = #tpu.dot_dimension_numbers<[1], [0], [0], [1], [0, 0, 1, 1], [], []>} : vector<16x8xbf16>, vector<8x32xbf16>, vector<16x32xf32> -> vector<16x32xf32>
    %317 = arith.addf %295, %316 : vector<16x32xf32>
    %318 = vector.extract_strided_slice %219 {offsets = [0, 0], sizes = [1, 32], strides = [1, 1]} : vector<2x32xf32> to vector<1x32xf32>
    %319 = vector.broadcast %318 : vector<1x32xf32> to vector<16x32xf32>
    %320 = arith.addf %317, %319 : vector<16x32xf32>
    %321 = arith.addf %215, %320 : vector<16x32xf32>
    %322 = vector.extract_strided_slice %217 {offsets = [0, 0], sizes = [1, 32], strides = [1, 1]} : vector<4x32xf32> to vector<1x32xf32>
    %323 = vector.extract_strided_slice %217 {offsets = [1, 0], sizes = [1, 32], strides = [1, 1]} : vector<4x32xf32> to vector<1x32xf32>
    %cst_124 = arith.constant dense<0.000000e+00> : vector<16xf32>
    %324 = vector.multi_reduction <add>, %321, %cst_124 [1] : vector<16x32xf32> to vector<16xf32>
    %325 = vector.shape_cast %324 : vector<16xf32> to vector<16x1xf32>
    %cst_125 = arith.constant 3.200000e+01 : f32
    %326 = vector.broadcast %cst_125 : f32 to vector<16x1xf32>
    %327 = arith.divf %325, %326 : vector<16x1xf32>
    %328 = vector.broadcast %327 : vector<16x1xf32> to vector<16x32xf32>
    %329 = arith.subf %321, %328 : vector<16x32xf32>
    %330 = arith.mulf %329, %329 : vector<16x32xf32>
    %cst_126 = arith.constant dense<0.000000e+00> : vector<16xf32>
    %331 = vector.multi_reduction <add>, %330, %cst_126 [1] : vector<16x32xf32> to vector<16xf32>
    %332 = vector.shape_cast %331 : vector<16xf32> to vector<16x1xf32>
    %cst_127 = arith.constant 3.200000e+01 : f32
    %333 = vector.broadcast %cst_127 : f32 to vector<16x1xf32>
    %334 = arith.divf %332, %333 : vector<16x1xf32>
    %335 = vector.broadcast %327 : vector<16x1xf32> to vector<16x32xf32>
    %336 = arith.subf %321, %335 : vector<16x32xf32>
    %cst_128 = arith.constant 9.99999996E-13 : f32
    %337 = vector.broadcast %cst_128 : f32 to vector<16x1xf32>
    %338 = arith.addf %334, %337 : vector<16x1xf32>
    %339 = math.rsqrt %338 : vector<16x1xf32>
    %340 = vector.broadcast %339 : vector<16x1xf32> to vector<16x32xf32>
    %341 = arith.mulf %336, %340 : vector<16x32xf32>
    %342 = vector.broadcast %322 : vector<1x32xf32> to vector<16x32xf32>
    %343 = arith.mulf %341, %342 : vector<16x32xf32>
    %344 = vector.broadcast %323 : vector<1x32xf32> to vector<16x32xf32>
    %345 = arith.addf %343, %344 : vector<16x32xf32>
    %346 = arith.truncf %345 : vector<16x32xf32> to vector<16x32xbf16>
    %c1_129 = arith.constant 1 : index
    %c0_130 = arith.constant 0 : index
    %c0_131 = arith.constant 0 : index
    %347 = vector.load %arg10[%c1_129, %c0_130, %c0_131] : memref<2x32x64xbf16, #tpu.memory_space<vmem>>, vector<1x32x64xbf16>
    %348 = vector.shape_cast %347 : vector<1x32x64xbf16> to vector<32x64xbf16>
    %cst_132 = arith.constant dense<0.000000e+00> : vector<16x64xf32>
    %349 = tpu.matmul %346, %348, %cst_132 {dimension_numbers = #tpu.dot_dimension_numbers<[1], [0], [0], [1], [0, 0, 1, 1], [], []>} : vector<16x32xbf16>, vector<32x64xbf16>, vector<16x64xf32> -> vector<16x64xf32>
    %c1_133 = arith.constant 1 : index
    %c0_134 = arith.constant 0 : index
    %c0_135 = arith.constant 0 : index
    %350 = vector.load %arg11[%c1_133, %c0_134, %c0_135] : memref<2x1x64xf32, #tpu.memory_space<vmem>>, vector<1x1x64xf32>
    %351 = vector.shape_cast %350 : vector<1x1x64xf32> to vector<1x64xf32>
    %352 = vector.broadcast %351 : vector<1x64xf32> to vector<16x64xf32>
    %353 = arith.addf %349, %352 : vector<16x64xf32>
    %cst_136 = arith.constant 5.000000e-01 : f32
    %354 = vector.broadcast %cst_136 : f32 to vector<16x64xf32>
    %355 = arith.mulf %354, %353 : vector<16x64xf32>
    %cst_137 = arith.constant 4.471500e-02 : f32
    %356 = vector.broadcast %cst_137 : f32 to vector<16x64xf32>
    %357 = arith.mulf %356, %353 : vector<16x64xf32>
    %358 = arith.mulf %357, %353 : vector<16x64xf32>
    %359 = arith.mulf %358, %353 : vector<16x64xf32>
    %360 = arith.addf %353, %359 : vector<16x64xf32>
    %cst_138 = arith.constant 0.797884583 : f32
    %361 = vector.broadcast %cst_138 : f32 to vector<16x64xf32>
    %362 = arith.mulf %361, %360 : vector<16x64xf32>
    %363 = math.tanh %362 : vector<16x64xf32>
    %cst_139 = arith.constant 1.000000e+00 : f32
    %364 = vector.broadcast %cst_139 : f32 to vector<16x64xf32>
    %365 = arith.addf %364, %363 : vector<16x64xf32>
    %366 = arith.mulf %355, %365 : vector<16x64xf32>
    %367 = arith.truncf %366 : vector<16x64xf32> to vector<16x64xbf16>
    %c1_140 = arith.constant 1 : index
    %c0_141 = arith.constant 0 : index
    %c0_142 = arith.constant 0 : index
    %368 = vector.load %arg12[%c1_140, %c0_141, %c0_142] : memref<2x64x32xbf16, #tpu.memory_space<vmem>>, vector<1x64x32xbf16>
    %369 = vector.shape_cast %368 : vector<1x64x32xbf16> to vector<64x32xbf16>
    %cst_143 = arith.constant dense<0.000000e+00> : vector<16x32xf32>
    %370 = tpu.matmul %367, %369, %cst_143 {dimension_numbers = #tpu.dot_dimension_numbers<[1], [0], [0], [1], [0, 0, 1, 1], [], []>} : vector<16x64xbf16>, vector<64x32xbf16>, vector<16x32xf32> -> vector<16x32xf32>
    %371 = vector.extract_strided_slice %219 {offsets = [1, 0], sizes = [1, 32], strides = [1, 1]} : vector<2x32xf32> to vector<1x32xf32>
    %372 = vector.broadcast %371 : vector<1x32xf32> to vector<16x32xf32>
    %373 = arith.addf %370, %372 : vector<16x32xf32>
    %374 = arith.addf %345, %373 : vector<16x32xf32>
    %375 = vector.extract_strided_slice %217 {offsets = [2, 0], sizes = [1, 32], strides = [1, 1]} : vector<4x32xf32> to vector<1x32xf32>
    %376 = vector.extract_strided_slice %217 {offsets = [3, 0], sizes = [1, 32], strides = [1, 1]} : vector<4x32xf32> to vector<1x32xf32>
    %cst_144 = arith.constant dense<0.000000e+00> : vector<16xf32>
    %377 = vector.multi_reduction <add>, %374, %cst_144 [1] : vector<16x32xf32> to vector<16xf32>
    %378 = vector.shape_cast %377 : vector<16xf32> to vector<16x1xf32>
    %cst_145 = arith.constant 3.200000e+01 : f32
    %379 = vector.broadcast %cst_145 : f32 to vector<16x1xf32>
    %380 = arith.divf %378, %379 : vector<16x1xf32>
    %381 = vector.broadcast %380 : vector<16x1xf32> to vector<16x32xf32>
    %382 = arith.subf %374, %381 : vector<16x32xf32>
    %383 = arith.mulf %382, %382 : vector<16x32xf32>
    %cst_146 = arith.constant dense<0.000000e+00> : vector<16xf32>
    %384 = vector.multi_reduction <add>, %383, %cst_146 [1] : vector<16x32xf32> to vector<16xf32>
    %385 = vector.shape_cast %384 : vector<16xf32> to vector<16x1xf32>
    %cst_147 = arith.constant 3.200000e+01 : f32
    %386 = vector.broadcast %cst_147 : f32 to vector<16x1xf32>
    %387 = arith.divf %385, %386 : vector<16x1xf32>
    %388 = vector.broadcast %380 : vector<16x1xf32> to vector<16x32xf32>
    %389 = arith.subf %374, %388 : vector<16x32xf32>
    %cst_148 = arith.constant 9.99999996E-13 : f32
    %390 = vector.broadcast %cst_148 : f32 to vector<16x1xf32>
    %391 = arith.addf %387, %390 : vector<16x1xf32>
    %392 = math.rsqrt %391 : vector<16x1xf32>
    %393 = vector.broadcast %392 : vector<16x1xf32> to vector<16x32xf32>
    %394 = arith.mulf %389, %393 : vector<16x32xf32>
    %395 = vector.broadcast %375 : vector<1x32xf32> to vector<16x32xf32>
    %396 = arith.mulf %394, %395 : vector<16x32xf32>
    %397 = vector.broadcast %376 : vector<1x32xf32> to vector<16x32xf32>
    %398 = arith.addf %396, %397 : vector<16x32xf32>
    %399 = vector.extract_strided_slice %398 {offsets = [0, 0], sizes = [1, 32], strides = [1, 1]} : vector<16x32xf32> to vector<1x32xf32>
    %400 = vector.extract_strided_slice %398 {offsets = [8, 0], sizes = [1, 32], strides = [1, 1]} : vector<16x32xf32> to vector<1x32xf32>
    %401 = tpu.concatenate %399, %400 in 0 : vector<1x32xf32>, vector<1x32xf32> -> vector<2x32xf32>
    %c0_149 = arith.constant 0 : index
    %c0_150 = arith.constant 0 : index
    %402 = vector.load %arg13[%c0_149, %c0_150] : memref<2x32xf32, #tpu.memory_space<vmem>>, vector<2x32xf32>
    tpu.vector_store %arg13[%c0_149, %c0_150], %401 {strides = array<i32>} : memref<2x32xf32, #tpu.memory_space<vmem>>, vector<2x32xf32>,
    return
  }
}

</mosaic_0001>

<bundles_post_ra>
// kernel: electra_forward.1
= control target key start
LH: loop header
LB: loop body
LE: loop exit
PB: predicated region body
PF: predicated region fallthrough
CT: control target
= control target key end

     0   :  { %vm49_vm0 = vcmask 130048   ;;  %s3275_s0 = inlined_call_operand.vmem [shape: f32[16,16], index: 0, kind: input, shape index: {}]   ;;  %s3276_s1 = inlined_call_operand.vmem [shape: f32[16,16], index: 1, kind: input, shape index: {}]   ;;  %s3277_s2 = inlined_call_operand.vmem [shape: f32[2,16], index: 2, kind: input, shape index: {}]   ;;  %s3278_s3 = inlined_call_operand.vmem [shape: bf16[16,32], index: 3, kind: input, shape index: {}]   ;;  %s3279_s4 = inlined_call_operand.vmem [shape: f32[1,32], index: 4, kind: input, shape index: {}]   ;;  %s3280_s5 = inlined_call_operand.vmem [shape: bf16[2,32,96], index: 5, kind: input, shape index: {}]   ;;  %s3281_s6 = inlined_call_operand.vmem [shape: bf16[8,8,32], index: 6, kind: input, shape index: {}]   ;;  %s3282_s7 = inlined_call_operand.vmem [shape: f32[2,1,96], index: 7, kind: input, shape index: {}]   ;;  %s3283_s8 = inlined_call_operand.vmem [shape: f32[2,2,32], index: 8, kind: input, shape index: {}]   ;;  %s3284_s9 = inlined_call_operand.vmem [shape: f32[2,4,32], index: 9, kind: input, shape index: {}]   ;;  %s3285_s10 = inlined_call_operand.vmem [shape: bf16[2,32,64], index: 10, kind: input, shape index: {}]   ;;  %s3286_s11 = inlined_call_operand.vmem [shape: f32[2,1,64], index: 11, kind: input, shape index: {}]   ;;  %s3287_s12 = inlined_call_operand.vmem [shape: bf16[2,64,32], index: 12, kind: input, shape index: {}]   ;;  %s3288_s13 = inlined_call_operand.hbm [shape: f32[2,32], index: 13, kind: output, shape index: {}]  }
   0x1   :  { %v46_v0 = vld [vmem:[%s3275_s0] sm:$0xff]  ;;  %v47_v1 = vld [vmem:[%s3275_s0 + $0x8] sm:$0xff] }
   0x2   :  { %v50_v2 = vsel %vm49_vm0, %v46_v0, 0.0  ;;  %v53_v3 = vsel %vm49_vm0, %v47_v1, 0.0 }
   0x3   :  { %51 = vadd.xlane.f32.xlu0 %v50_v2 }
   0x7   :  { %54 = vadd.xlane.f32.xlu0 %v53_v3 }
   0x8   :  { %18 = vsyncpa [#allocation3], 0  ;;  %v2577_v14 = vld [vmem:[%s3278_s3] sm:$0xff]   ;;  %v2712_v15 = vmov 0.0   ;;  %vm2713_vm1 = vmmov 0   ;;  %v77_v20 = vlaneseq  ;;  %v2579_v39 = vld [vmem:[%s3280_s5 + $0x8] sm:$0xff]  }
   0x9   :  { %2357 = vmatprep.subr.bf16.mxu0 %v2712_v15  ;;  %2359 = vmatprep.mubr.msk.bf16.mxu0 %vm2713_vm1, %v2712_v15  ;;  %v48_v25 = vld [vmem:[%s3277_s2] sm:$0x3]  ;;  %vm177_vm2 = vcmask 261120   ;;  %s2715_s21 = smov 96   ;;  %s2716_s22 = smov 120   ;;  %vm226_vm3 = vcmask 64512  }
   0xa   :  { %2358 = vmatpush3.bf16.msra.mxu0 %v2577_v14  ;;  %2377 = vmatprep.subr.bf16.mxu1 %v2712_v15  ;;  %v2816_v23 = vshrl.u32 %v77_v20, 7  ;;  %v2578_v38 = vld [vmem:[%s3280_s5] sm:$0xff]   ;;  %v2882_v63 = vld [vmem:[%s3276_s1 + $0x8] sm:$0xff]  ;;  %s2717_s27 = smov 64   ;;  %s2718_s28 = smov 80   ;;  %vm473_vm4 = vcmask 1043456  }
   0xb   :  { %2363 = vmatprep.subr.bf16.mxu0 %v2712_v15  ;;  %2379 = vmatprep.mubr.msk.bf16.mxu1 %vm2713_vm1, %v2712_v15  ;;  %v2205_v40 = vld [vmem:[%s3279_s4] ss:$0 sm:$0xff]  ;;  %s2714_s4 = smov 88   ;;  %s2719_s0 = smov 112   ;;  %vm1081_vm5 = vcmask 523264   ;;  %vm2187_vm6 = vcmask 1040384  }
   0xc   :  { %v2819_v24 = vsub.s32 0, %v2816_v23  ;;  %v2826_v29 = vsub.s32 1, %v2816_v23  ;;  %v2208_v48 = vld [vmem:[%s3282_s7] ss:$0 sm:$0xff]  ;;  %s2720_s29 = smov 56   ;;  %s2721_s15 = smov 48  }
   0xd   :  { %v2877_v61 = vld [vmem:[%s3276_s1] sm:$0xff]  ;;  %s2722_s16 = smov 104   ;;  %s2723_s17 = smov 72   ;;  %vm2189_vm7 = vcmask 254976  }
   0xe   :  { %v80_v28 = vrot.slane %v48_v25, %v2819_v24  ;;  %v86_v33 = vrot.slane %v48_v25, %v2826_v29  ;;  %s2724_s20 = smov 40  }
  0x90   :  { %v52_v4 = vpop.xlane.xlu0 %51 }
  0x91   :  { %v57_v5 = vmul.f32 0.0625, %v52_v4 }
  0x93   :  { %v59_v6 = vsub.f32 %v46_v0, %v57_v5 }
  0x94   :  { %v55_v7 = vpop.xlane.xlu0 %54 }
  0x95   :  { %v58_v8 = vmul.f32 0.0625, %v55_v7  ;;  %v61_v9 = vmul.f32 %v59_v6, %v59_v6 }
  0x97   :  { %v60_v10 = vsub.f32 %v47_v1, %v58_v8  ;;  %v63_v11 = vsel %vm49_vm0, %v61_v9, 0.0 }
  0x98   :  { %64 = vadd.xlane.f32.xlu1 %v63_v11 }
  0x99   :  { %v62_v12 = vmul.f32 %v60_v10, %v60_v10 }
  0x9b   :  { %v66_v13 = vsel %vm49_vm0, %v62_v12, 0.0 }
  0x9c   :  { %67 = vadd.xlane.f32.xlu1 %v66_v13 }
 0x125   :  { %v65_v16 = vpop.xlane.xlu1 %64 }
 0x126   :  { %v69_v17 = vmul.f32 0.0625, %v65_v16 }
 0x128   :  { %v71_v18 = vadd.f32 1e-12, %v69_v17 }
 0x129   :  { %v68_v19 = vpop.xlane.xlu1 %67 }
 0x12a   :  { %2594 = vrsqrt.f32 %v71_v18  ;;  %v70_v21 = vmul.f32 0.0625, %v68_v19 }
 0x12c   :  { %v72_v22 = vadd.f32 1e-12, %v70_v21 }
 0x12e   :  { %2596 = vrsqrt.f32 %v72_v22 }
 0x134   :  { %v2595_v26 = vpop.eup %2594 }
 0x135   :  { %v75_v27 = vmul.f32 %v2595_v26, %v59_v6 }
 0x137   :  { %v81_v32 = vmul.f32 %v80_v28, %v75_v27 }
 0x138   :  { %v2597_v30 = vpop.eup %2596 }
 0x139   :  { %v76_v31 = vmul.f32 %v2597_v30, %v60_v10  ;;  %v87_v35 = vadd.f32 %v86_v33, %v81_v32 }
 0x13b   :  { %v82_v34 = vmul.f32 %v80_v28, %v76_v31 }
 0x13d   :  { %v88_v36 = vadd.f32 %v86_v33, %v82_v34 }
 0x13f   :  { %v89_v37 = vpack.c.bf16 %v88_v36, %v87_v35 }
 0x141   :  { %2360 = vmatmul.mubr.msk.bf16.vlgmr.msra.gmra.mrb[0].mxu0 %vm49_vm0, %v89_v37 }
 0x142   :  { %2367 = vmatprep.mubr.msk.bf16.mxu0 %vm2713_vm1, %v2712_v15  ;;  %2364 = vmatpush3.bf16.msra.mxu0 %v2578_v38 }
 0x143   :  { %2365 = vmatprep.subr.bf16.mxu0 %v2712_v15 }
 0x146   :  { %2366 = vmatpush3.bf16.msra.mxu0 %v2579_v39 }
 0x147   :  { %2371 = vmatprep.subr.bf16.mxu0 %v2712_v15 }
 0x214   :  { %v142_v41 = vpop.f32.mrb[0].mxu0 }
 0x215   :  { %v2361_v42 = vpop.f32.mrb[1].mxu0  ;;  %v2843_v44 = vadd.f32 %v2205_v40, %v142_v41 }
 0x216   :  { %v145_v43 = vpop.f32.mrb[2].mxu0 }
 0x217   :  { %v2845_v45 = vadd.f32 %v2205_v40, %v145_v43  ;;  %v2362_v46 = vpop.f32.mrb[3].mxu0 }
 0x219   :  { %v153_v47 = vpack.c.bf16 %v2845_v45, %v2843_v44 }
 0x21b   :  { %2368 = vmatmul.mubr.msk.bf16.vlgmr.msra.gmra.mrb[4].mxu0 %vm177_vm2, %v153_v47 }
 0x21c   :  { %2373 = vmatprep.mubr.msk.bf16.mxu0 %vm2713_vm1, %v2712_v15 }
 0x2ee   :  { %v215_v49 = vpop.f32.mrb[4].mxu0 }
 0x2ef   :  { %v2369_v50 = vpop.f32.mrb[5].mxu0  ;;  %v216_v52 = vadd.f32 %v2208_v48, %v215_v49 }
 0x2f0   :  { %v218_v51 = vpop.f32.mrb[6].mxu0 }
 0x2f1   :  { %v219_v53 = vadd.f32 %v2208_v48, %v218_v51  ;;  %v2370_v54 = vpop.f32.mrb[7].mxu0 }
 0x2f3   :  { %v2855_v55 = vpack.c.bf16 %v219_v53, %v216_v52 }
 0x2f5   :  { %348 = vrot.lane.b32.xlu1 %v2855_v55, %s2714_s4  ;;  %224 = vrot.lane.b32.xlu0 %v2855_v55, %s2715_s21 }
 0x2f9   :  { %346 = vrot.lane.b32.xlu1 %v2855_v55, %s2716_s22 }
 0x367   :  { %v225_v56 = vpop.permute.xlu0 %224  ;;  %v349_v58 = vpop.permute.xlu1 %348 }
 0x368   :  { %v231_v57 = vsel %vm226_vm3, %v225_v56, 0  ;;  %v354_v59 = vsel %vm226_vm3, %v349_v58, 0  ;;  %v345_v58 = vld [vmem:[%s3281_s6] sm:$0xf] }
 0x369   :  { %2372 = vmatpush3.bf16.xpose.msra.mxu0 %v231_v57 }
 0x36a   :  { %2383 = vmatprep.subr.bf16.mxu0 %v2712_v15 }
 0x36b   :  { %v347_v60 = vpop.permute.xlu1 %346 }
 0x370   :  { %2374 = vmatmul.mubr.msk.bf16.vlgmr.msra.gmra.mrb[8].mxu0 %vm226_vm3, %v2855_v55 }
 0x371   :  { %2384 = vmatpush3.bf16.xpose.msra.mxu0 %v354_v59  ;;  %2385 = vmatprep.mubr.msk.bf16.mxu0 %vm2713_vm1, %v2712_v15  ;;  %v522_v59 = vsel %vm473_vm4, %v345_v58, 0 }
 0x372   :  { %2395 = vmatprep.subr.bf16.mxu0 %v2712_v15 }
 0x378   :  { %2386 = vmatmul.mubr.msk.bf16.vlgmr.msra.gmra.mrb[12].mxu0 %vm226_vm3, %v347_v60  ;;  %v2216_v60 = vld [vmem:[%s3281_s6 + $0x4] sm:$0xf] }
 0x379   :  { %2397 = vmatprep.mubr.msk.bf16.mxu0 %vm2713_vm1, %v2712_v15 }
 0x443   :  { %v267_v62 = vpop.f32.mrb[8].mxu0 }
 0x444   :  { %v268_v0 = vadd.f32 %v267_v62, %v2877_v61  ;;  %v2375_v1 = vpop.f32.mrb[9].mxu0  ;;  %v475_v62 = vsel %vm473_vm4, %v2216_v60, 0 }
 0x445   :  { %v270_v2 = vpop.f32.mrb[10].mxu0  ;;  %2396 = vmatpush3.bf16.msra.mxu0 %v475_v62 }
 0x446   :  { %v271_v3 = vadd.f32 %v270_v2, %v2882_v63  ;;  %v2376_v4 = vpop.f32.mrb[11].mxu0  ;;  %v274_v5 = vsel %vm49_vm0, %v268_v0, -inf  ;;  %2407 = vmatprep.subr.bf16.mxu0 %v2712_v15 }
 0x447   :  { %275 = vmax.xlane.f32.xlu1 %v274_v5 }
 0x448   :  { %v277_v6 = vsel %vm49_vm0, %v271_v3, -inf }
 0x449   :  { %278 = vmax.xlane.f32.xlu0 %v277_v6 }
 0x44b   :  { %v390_v7 = vpop.f32.mrb[12].mxu0 }
 0x44c   :  { %v391_v8 = vadd.f32 %v390_v7, %v2877_v61  ;;  %v2387_v9 = vpop.f32.mrb[13].mxu0 }
 0x44d   :  { %v393_v10 = vpop.f32.mrb[14].mxu0 }
 0x44e   :  { %v394_v11 = vadd.f32 %v393_v10, %v2882_v63  ;;  %v2388_v12 = vpop.f32.mrb[15].mxu0  ;;  %v397_v13 = vsel %vm49_vm0, %v391_v8, -inf }
 0x44f   :  { %398 = vmax.xlane.f32.xlu0 %v397_v13 }
 0x450   :  { %v400_v14 = vsel %vm49_vm0, %v394_v11, -inf }
 0x453   :  { %401 = vmax.xlane.f32.xlu0 %v400_v14 }
 0x4d4   :  { %v276_v16 = vpop.xlane.xlu1 %275 }
 0x4d5   :  { %v280_v17 = vsub.f32 %v268_v0, %v276_v16 }
 0x4d6   :  { %v279_v18 = vpop.xlane.xlu0 %278 }
 0x4d7   :  { %v282_v19 = vmul.f32 1.442695, %v280_v17  ;;  %v281_v20 = vsub.f32 %v271_v3, %v279_v18 }
 0x4d9   :  { %2598 = vpow2.f32 %v282_v19  ;;  %v284_v21 = vmul.f32 1.442695, %v281_v20 }
 0x4db   :  { %2600 = vpow2.f32 %v284_v21 }
 0x4dc   :  { %v399_v22 = vpop.xlane.xlu0 %398 }
 0x4dd   :  { %v403_v25 = vsub.f32 %v391_v8, %v399_v22 }
 0x4df   :  { %v405_v26 = vmul.f32 1.442695, %v403_v25 }
 0x4e0   :  { %v402_v27 = vpop.xlane.xlu0 %401 }
 0x4e1   :  { %2602 = vpow2.f32 %v405_v26  ;;  %v404_v28 = vsub.f32 %v394_v11, %v402_v27 }
 0x4e3   :  { %v2599_v30 = vpop.eup %2598  ;;  %v407_v31 = vmul.f32 1.442695, %v404_v28 }
 0x4e4   :  { %v286_v32 = vsel %vm49_vm0, %v2599_v30, 0.0 }
 0x4e5   :  { %v2601_v33 = vpop.eup %2600  ;;  %2604 = vpow2.f32 %v407_v31  ;;  %287 = vadd.xlane.f32.xlu1 %v286_v32 }
 0x4e6   :  { %v289_v34 = vsel %vm49_vm0, %v2601_v33, 0.0 }
 0x4e7   :  { %290 = vadd.xlane.f32.xlu0 %v289_v34 }
 0x4eb   :  { %v2603_v35 = vpop.eup %2602 }
 0x4ec   :  { %v409_v36 = vsel %vm49_vm0, %v2603_v35, 0.0 }
 0x4ed   :  { %410 = vadd.xlane.f32.xlu1 %v409_v36 }
 0x4ef   :  { %v2605_v37 = vpop.eup %2604 }
 0x4f0   :  { %v412_v38 = vsel %vm49_vm0, %v2605_v37, 0.0 }
 0x4f1   :  { %413 = vadd.xlane.f32.xlu0 %v412_v38 }
 0x4fe   :  { %297 = vrot.lane.b32.xlu1 %v2855_v55, %s2717_s27 }
 0x502   :  { %567 = vrot.lane.b32.xlu1 %v2855_v55, %s2718_s28 }
 0x506   :  { %565 = vrot.lane.b32.xlu1 %v2855_v55, %s2719_s0 }
 0x507   :  { %420 = vrot.lane.b32.xlu0 %v2855_v55, %s2720_s29 }
 0x572   :  { %v288_v39 = vpop.xlane.xlu1 %287 }
 0x573   :  { %2606 = vrcp.f32 %v288_v39 }
 0x574   :  { %v291_v40 = vpop.xlane.xlu0 %290 }
 0x575   :  { %2608 = vrcp.f32 %v291_v40 }
 0x57a   :  { %v411_v41 = vpop.xlane.xlu1 %410 }
 0x57b   :  { %2610 = vrcp.f32 %v411_v41 }
 0x57d   :  { %v2607_v42 = vpop.eup %2606 }
 0x57e   :  { %v298_v43 = vpop.permute.xlu1 %297  ;;  %v414_v46 = vpop.xlane.xlu0 %413  ;;  %v294_v48 = vmul.f32 %v2607_v42, %v2599_v30 }
 0x57f   :  { %v2609_v47 = vpop.eup %2608  ;;  %2612 = vrcp.f32 %v414_v46  ;;  %2378 = vmatpush3.bf16.msra.mxu1 %v298_v43 }
 0x580   :  { %2389 = vmatprep.subr.bf16.mxu1 %v2712_v15  ;;  %v295_v49 = vmul.f32 %v2609_v47, %v2601_v33 }
 0x582   :  { %v421_v50 = vpop.permute.xlu0 %420  ;;  %v296_v51 = vpack.c.bf16 %v295_v49, %v294_v48  ;;  %v568_v7 = vpop.permute.xlu1 %567 }
 0x583   :  { %v573_v11 = vsel %vm226_vm3, %v568_v7, 0 }
 0x584   :  { %2380 = vmatmul.mubr.msk.bf16.vlgmr.msra.gmra.mrb[0].mxu1 %vm49_vm0, %v296_v51 }
 0x585   :  { %2390 = vmatpush3.bf16.msra.mxu1 %v421_v50  ;;  %2391 = vmatprep.mubr.msk.bf16.mxu1 %vm2713_vm1, %v2712_v15  ;;  %v2611_v52 = vpop.eup %2610 }
 0x586   :  { %2401 = vmatprep.subr.bf16.mxu1 %v2712_v15  ;;  %v417_v54 = vmul.f32 %v2611_v52, %v2603_v35  ;;  %v566_v12 = vpop.permute.xlu1 %565 }
 0x589   :  { %v2613_v53 = vpop.eup %2612 }
 0x58a   :  { %v418_v56 = vmul.f32 %v2613_v53, %v2605_v37 }
 0x58c   :  { %v419_v57 = vpack.c.bf16 %v418_v56, %v417_v54 }
 0x58e   :  { %2392 = vmatmul.mubr.msk.bf16.vlgmr.msra.gmra.mrb[4].mxu1 %vm49_vm0, %v419_v57 }
 0x58f   :  { %2403 = vmatprep.mubr.msk.bf16.mxu1 %vm2713_vm1, %v2712_v15  ;;  %2402 = vmatpush3.bf16.msra.mxu1 %v522_v59  ;;  %v2221_v59 = vld [vmem:[%s3281_s6 + $0x8] sm:$0xf] }
 0x590   :  { %2413 = vmatprep.subr.bf16.mxu1 %v2712_v15  ;;  %v693_v60 = vsel %vm473_vm4, %v2221_v59, 0 }
 0x657   :  { %v337_v0 = vpop.f32.mrb[0].mxu1 }
 0x658   :  { %v2381_v1 = vpop.f32.mrb[1].mxu1 }
 0x659   :  { %v340_v2 = vpop.f32.mrb[2].mxu1 }
 0x65a   :  { %v344_v3 = vpack.c.bf16 %v340_v2, %v337_v0  ;;  %v2382_v4 = vpop.f32.mrb[3].mxu1 }
 0x65c   :  { %2404 = vmatmul.mubr.msk.bf16.vlgmr.msra.gmra.mrb[8].mxu1 %vm226_vm3, %v344_v3 }
 0x65d   :  { %2415 = vmatprep.mubr.msk.bf16.mxu1 %vm2713_vm1, %v2712_v15 }
 0x661   :  { %v460_v5 = vpop.f32.mrb[4].mxu1 }
 0x662   :  { %v2393_v6 = vpop.f32.mrb[5].mxu1 }
 0x663   :  { %v463_v8 = vpop.f32.mrb[6].mxu1 }
 0x664   :  { %v467_v9 = vpack.c.bf16 %v463_v8, %v460_v5  ;;  %v2394_v10 = vpop.f32.mrb[7].mxu1 }
 0x666   :  { %2398 = vmatmul.mubr.msk.bf16.vlgmr.msra.gmra.mrb[16].mxu0 %vm226_vm3, %v467_v9 }
 0x667   :  { %2408 = vmatpush3.bf16.xpose.msra.mxu0 %v573_v11  ;;  %2409 = vmatprep.mubr.msk.bf16.mxu0 %vm2713_vm1, %v2712_v15 }
 0x668   :  { %2419 = vmatprep.subr.bf16.mxu0 %v2712_v15 }
 0x66e   :  { %2410 = vmatmul.mubr.msk.bf16.vlgmr.msra.gmra.mrb[20].mxu0 %vm226_vm3, %v566_v12 }
 0x66f   :  { %2421 = vmatprep.mubr.msk.bf16.mxu0 %vm2713_vm1, %v2712_v15  ;;  %2420 = vmatpush3.bf16.msra.mxu0 %v693_v60 }
 0x670   :  { %2431 = vmatprep.subr.bf16.mxu0 %v2712_v15 }
 0x72f   :  { %v558_v13 = vpop.f32.mrb[8].mxu1 }
 0x730   :  { %v2405_v14 = vpop.f32.mrb[9].mxu1 }
 0x731   :  { %v561_v16 = vpop.f32.mrb[10].mxu1 }
 0x732   :  { %v2406_v17 = vpop.f32.mrb[11].mxu1 }
 0x739   :  { %v511_v18 = vpop.f32.mrb[16].mxu0 }
 0x73a   :  { %v2933_v19 = vadd.f32 %v558_v13, %v511_v18  ;;  %v2399_v20 = vpop.f32.mrb[17].mxu0 }
 0x73b   :  { %v514_v21 = vpop.f32.mrb[18].mxu0 }
 0x73c   :  { %v2935_v22 = vadd.f32 %v561_v16, %v514_v21  ;;  %v2400_v25 = vpop.f32.mrb[19].mxu0 }
 0x741   :  { %v609_v26 = vpop.f32.mrb[20].mxu0 }
 0x742   :  { %v610_v27 = vadd.f32 %v609_v26, %v2877_v61  ;;  %v2411_v28 = vpop.f32.mrb[21].mxu0 }
 0x743   :  { %v612_v30 = vpop.f32.mrb[22].mxu0 }
 0x744   :  { %v613_v31 = vadd.f32 %v612_v30, %v2882_v63  ;;  %v2412_v32 = vpop.f32.mrb[23].mxu0  ;;  %v616_v33 = vsel %vm49_vm0, %v610_v27, -inf }
 0x745   :  { %617 = vmax.xlane.f32.xlu1 %v616_v33 }
 0x746   :  { %v619_v34 = vsel %vm49_vm0, %v613_v31, -inf }
 0x747   :  { %620 = vmax.xlane.f32.xlu0 %v619_v34 }
 0x756   :  { %639 = vrot.lane.b32.xlu1 %v2855_v55, %s2721_s15 }
 0x75a   :  { %738 = vrot.lane.b32.xlu1 %v2855_v55, %s2722_s16 }
 0x7d2   :  { %v618_v35 = vpop.xlane.xlu1 %617 }
 0x7d3   :  { %v622_v36 = vsub.f32 %v610_v27, %v618_v35 }
 0x7d4   :  { %v621_v37 = vpop.xlane.xlu0 %620 }
 0x7d5   :  { %v624_v38 = vmul.f32 1.442695, %v622_v36  ;;  %v623_v39 = vsub.f32 %v613_v31, %v621_v37 }
 0x7d6   :  { %v640_v40 = vpop.permute.xlu1 %639 }
 0x7d7   :  { %2614 = vpow2.f32 %v624_v38  ;;  %v626_v41 = vmul.f32 1.442695, %v623_v39  ;;  %2414 = vmatpush3.bf16.msra.mxu1 %v640_v40 }
 0x7d8   :  { %2425 = vmatprep.subr.bf16.mxu1 %v2712_v15 }
 0x7d9   :  { %2616 = vpow2.f32 %v626_v41 }
 0x7da   :  { %v739_v58 = vpop.permute.xlu1 %738 }
 0x7e1   :  { %v2615_v42 = vpop.eup %2614 }
 0x7e2   :  { %v628_v43 = vsel %vm49_vm0, %v2615_v42, 0.0 }
 0x7e3   :  { %v2617_v46 = vpop.eup %2616  ;;  %629 = vadd.xlane.f32.xlu0 %v628_v43 }
 0x7e4   :  { %v631_v47 = vsel %vm49_vm0, %v2617_v46, 0.0 }
 0x7e7   :  { %632 = vadd.xlane.f32.xlu0 %v631_v47 }
 0x7fd   :  { %740 = vrot.lane.b32.xlu0 %v2855_v55, %s2723_s17 }
 0x870   :  { %v630_v48 = vpop.xlane.xlu0 %629 }
 0x871   :  { %2618 = vrcp.f32 %v630_v48  ;;  %v2991_v48 = vld [vmem:[%s3283_s8] sm:$0x3] }
 0x874   :  { %v633_v49 = vpop.xlane.xlu0 %632 }
 0x875   :  { %2620 = vrcp.f32 %v633_v49  ;;  %v914_v49 = vrot.slane %v2991_v48, %v2819_v24 }
 0x878   :  { %v741_v54 = vpop.permute.xlu0 %740 }
 0x879   :  { %v746_v57 = vsel %vm226_vm3, %v741_v54, 0 }
 0x87b   :  { %v2619_v50 = vpop.eup %2618 }
 0x87c   :  { %v636_v52 = vmul.f32 %v2619_v50, %v2615_v42 }
 0x87f   :  { %v2621_v51 = vpop.eup %2620 }
 0x880   :  { %v637_v53 = vmul.f32 %v2621_v51, %v2617_v46 }
 0x882   :  { %v638_v56 = vpack.c.bf16 %v637_v53, %v636_v52 }
 0x884   :  { %2416 = vmatmul.mubr.msk.bf16.vlgmr.msra.gmra.mrb[12].mxu1 %vm49_vm0, %v638_v56 }
 0x885   :  { %2426 = vmatpush3.bf16.xpose.msra.mxu1 %v746_v57  ;;  %2427 = vmatprep.mubr.msk.bf16.mxu1 %vm2713_vm1, %v2712_v15 }
 0x886   :  { %2437 = vmatprep.subr.bf16.mxu1 %v2712_v15 }
 0x88c   :  { %2428 = vmatmul.mubr.msk.bf16.vlgmr.msra.gmra.mrb[16].mxu1 %vm226_vm3, %v739_v58 }
 0x88d   :  { %2439 = vmatprep.mubr.msk.bf16.mxu1 %vm2713_vm1, %v2712_v15 }
 0x957   :  { %v679_v62 = vpop.f32.mrb[12].mxu1 }
 0x958   :  { %v2417_v0 = vpop.f32.mrb[13].mxu1 }
 0x959   :  { %v682_v1 = vpop.f32.mrb[14].mxu1 }
 0x95a   :  { %v686_v2 = vpack.c.bf16 %v682_v1, %v679_v62  ;;  %v2418_v3 = vpop.f32.mrb[15].mxu1 }
 0x95c   :  { %2422 = vmatmul.mubr.msk.bf16.vlgmr.msra.gmra.mrb[24].mxu0 %vm226_vm3, %v686_v2 }
 0x95d   :  { %2433 = vmatprep.mubr.msk.bf16.mxu0 %vm2713_vm1, %v2712_v15 }
 0x95f   :  { %v782_v4 = vpop.f32.mrb[16].mxu1 }
 0x960   :  { %v783_v5 = vadd.f32 %v782_v4, %v2877_v61  ;;  %v2429_v6 = vpop.f32.mrb[17].mxu1 }
 0x961   :  { %v785_v7 = vpop.f32.mrb[18].mxu1 }
 0x962   :  { %v786_v8 = vadd.f32 %v785_v7, %v2882_v63  ;;  %v2430_v9 = vpop.f32.mrb[19].mxu1  ;;  %v789_v10 = vsel %vm49_vm0, %v783_v5, -inf }
 0x963   :  { %790 = vmax.xlane.f32.xlu1 %v789_v10  ;;  %v2581_v10 = vld [vmem:[%s3285_s10 + $0x8] sm:$0xff]  }
 0x964   :  { %v792_v11 = vsel %vm49_vm0, %v786_v8, -inf }
 0x965   :  { %793 = vmax.xlane.f32.xlu0 %v792_v11 }
 0x9f0   :  { %v791_v12 = vpop.xlane.xlu1 %790 }
 0x9f1   :  { %v795_v13 = vsub.f32 %v783_v5, %v791_v12 }
 0x9f2   :  { %v794_v14 = vpop.xlane.xlu0 %793 }
 0x9f3   :  { %v797_v16 = vmul.f32 1.442695, %v795_v13  ;;  %v796_v17 = vsub.f32 %v786_v8, %v794_v14 }
 0x9f5   :  { %2622 = vpow2.f32 %v797_v16  ;;  %v799_v18 = vmul.f32 1.442695, %v796_v17 }
 0x9f7   :  { %2624 = vpow2.f32 %v799_v18  ;;  %v3012_v18 = vld [vmem:[%s3284_s9] sm:$0xf] }
 0x9ff   :  { %v2623_v20 = vpop.eup %2622 }
 0xa00   :  { %v801_v21 = vsel %vm49_vm0, %v2623_v20, 0.0 }
 0xa01   :  { %v2625_v25 = vpop.eup %2624  ;;  %802 = vadd.xlane.f32.xlu0 %v801_v21  ;;  %v949_v21 = vrot.slane %v3012_v18, %v2819_v24 }
 0xa02   :  { %v804_v26 = vsel %vm49_vm0, %v2625_v25, 0.0 }
 0xa03   :  { %805 = vadd.xlane.f32.xlu1 %v804_v26 }
 0xa17   :  { %812 = vrot.lane.b32.xlu0 %v2855_v55, %s2724_s20 }
 0xa2f   :  { %v729_v27 = vpop.f32.mrb[24].mxu0 }
 0xa30   :  { %v736_v28 = vadd.f32 %v729_v27, %v2933_v19  ;;  %v2423_v30 = vpop.f32.mrb[25].mxu0  ;;  %v2225_v19 = vld [vmem:[%s3281_s6 + $0xc] sm:$0xf] }
 0xa31   :  { %v732_v31 = vpop.f32.mrb[26].mxu0  ;;  %v955_v30 = vrot.slane %v3012_v18, %v2826_v29 }
 0xa32   :  { %v737_v32 = vadd.f32 %v732_v31, %v2935_v22  ;;  %v2424_v33 = vpop.f32.mrb[27].mxu0  ;;  %v866_v22 = vsel %vm473_vm4, %v2225_v19, 0 }
 0xa33   :  { %2438 = vmatpush3.bf16.msra.mxu1 %v866_v22 }
 0xa34   :  { %2451 = vmatprep.subr.bf16.mxu1 %v2712_v15 }
 0xa8e   :  { %v803_v34 = vpop.xlane.xlu0 %802 }
 0xa8f   :  { %2626 = vrcp.f32 %v803_v34 }
 0xa90   :  { %v806_v35 = vpop.xlane.xlu1 %805 }
 0xa91   :  { %2628 = vrcp.f32 %v806_v35  ;;  %v2582_v35 = vld [vmem:[%s3287_s12] sm:$0xff]  }
 0xa92   :  { %v813_v36 = vpop.permute.xlu0 %812 }
 0xa93   :  { %2432 = vmatpush3.bf16.msra.mxu0 %v813_v36  ;;  %v2583_v36 = vld [vmem:[%s3287_s12 + $0x8] sm:$0xff]  }
 0xa94   :  { %2443 = vmatprep.subr.bf16.mxu0 %v2712_v15 }
 0xa99   :  { %v2627_v37 = vpop.eup %2626 }
 0xa9a   :  { %v809_v39 = vmul.f32 %v2627_v37, %v2623_v20  ;;  %v2584_v37 = vld [vmem:[%s3287_s12 + $0x10] sm:$0xff]  }
 0xa9b   :  { %v2629_v38 = vpop.eup %2628 }
 0xa9c   :  { %v810_v55 = vmul.f32 %v2629_v38, %v2625_v25  ;;  %v2585_v38 = vld [vmem:[%s3287_s12 + $0x18] sm:$0xff]  }
 0xa9e   :  { %v811_v40 = vpack.c.bf16 %v810_v55, %v809_v39  ;;  %v2227_v39 = vld [vmem:[%s3286_s11] ss:$0 sm:$0xff] }
 0xaa0   :  { %2434 = vmatmul.mubr.msk.bf16.vlgmr.msra.gmra.mrb[28].mxu0 %vm49_vm0, %v811_v40 }
 0xaa1   :  { %2447 = vmatprep.mubr.msk.bf16.mxu0 %vm2713_vm1, %v2712_v15 }
 0xb73   :  { %v852_v41 = vpop.f32.mrb[28].mxu0 }
 0xb74   :  { %v2435_v42 = vpop.f32.mrb[29].mxu0 }
 0xb75   :  { %v855_v43 = vpop.f32.mrb[30].mxu0 }
 0xb76   :  { %v859_v46 = vpack.c.bf16 %v855_v43, %v852_v41  ;;  %v2436_v47 = vpop.f32.mrb[31].mxu0 }
 0xb78   :  { %2440 = vmatmul.mubr.msk.bf16.vlgmr.msra.gmra.mrb[20].mxu1 %vm226_vm3, %v859_v46 }
 0xb79   :  { %2459 = vmatprep.mubr.msk.bf16.mxu1 %vm2713_vm1, %v2712_v15  ;;  %2452 = vmatpush3.bf16.msra.mxu1 %v2582_v35 }
 0xb7a   :  { %2453 = vmatprep.subr.bf16.mxu1 %v2712_v15 }
 0xb7d   :  { %2454 = vmatpush3.bf16.msra.mxu1 %v2583_v36 }
 0xb7e   :  { %2455 = vmatprep.subr.bf16.mxu1 %v2712_v15 }
 0xb81   :  { %2456 = vmatpush3.bf16.msra.mxu1 %v2584_v37  ;;  %v1156_v37 = vsub.s32 2, %v2816_v23 }
 0xb82   :  { %2457 = vmatprep.subr.bf16.mxu1 %v2712_v15 }
 0xb85   :  { %2458 = vmatpush3.bf16.msra.mxu1 %v2585_v38 }
 0xb86   :  { %2477 = vmatprep.subr.bf16.mxu1 %v2712_v15 }
 0xc4b   :  { %v902_v50 = vpop.f32.mrb[20].mxu1 }
 0xc4c   :  { %v909_v51 = vadd.f32 %v902_v50, %v736_v28  ;;  %v2441_v52 = vpop.f32.mrb[21].mxu1 }
 0xc4d   :  { %v905_v53 = vpop.f32.mrb[22].mxu1 }
 0xc4e   :  { %v915_v54 = vadd.f32 %v914_v49, %v909_v51  ;;  %v910_v56 = vadd.f32 %v905_v53, %v737_v32  ;;  %v2442_v57 = vpop.f32.mrb[23].mxu1 }
 0xc50   :  { %v916_v58 = vadd.f32 %v914_v49, %v910_v56  ;;  %v917_v59 = vadd.f32 %v915_v54, %v2843_v44 }
 0xc52   :  { %v919_v60 = vsel %vm177_vm2, %v917_v59, 0.0  ;;  %v918_v62 = vadd.f32 %v916_v58, %v2845_v45  ;;  %v2580_v45 = vld [vmem:[%s3285_s10] sm:$0xff]  }
 0xc53   :  { %920 = vadd.xlane.f32.xlu1 %v919_v60  ;;  %2444 = vmatpush3.bf16.msra.mxu0 %v2580_v45 }
 0xc54   :  { %v922_v0 = vsel %vm177_vm2, %v918_v62, 0.0  ;;  %2445 = vmatprep.subr.bf16.mxu0 %v2712_v15 }
 0xc57   :  { %923 = vadd.xlane.f32.xlu1 %v922_v0  ;;  %2446 = vmatpush3.bf16.msra.mxu0 %v2581_v10 }
 0xc58   :  { %2463 = vmatprep.subr.bf16.mxu0 %v2712_v15 }
 0xce0   :  { %v921_v1 = vpop.xlane.xlu1 %920 }
 0xce1   :  { %v926_v2 = vmul.f32 0.03125, %v921_v1 }
 0xce3   :  { %v928_v3 = vsub.f32 %v917_v59, %v926_v2 }
 0xce4   :  { %v924_v4 = vpop.xlane.xlu1 %923 }
 0xce5   :  { %v927_v5 = vmul.f32 0.03125, %v924_v4  ;;  %v930_v6 = vmul.f32 %v928_v3, %v928_v3  ;;  %v1056_v4 = vrot.slane %v2991_v48, %v2826_v29 }
 0xce7   :  { %v929_v7 = vsub.f32 %v918_v62, %v927_v5  ;;  %v932_v8 = vsel %vm177_vm2, %v930_v6, 0.0 }
 0xce8   :  { %933 = vadd.xlane.f32.xlu1 %v932_v8 }
 0xce9   :  { %v931_v9 = vmul.f32 %v929_v7, %v929_v7 }
 0xceb   :  { %v935_v44 = vsel %vm177_vm2, %v931_v9, 0.0 }
 0xcec   :  { %936 = vadd.xlane.f32.xlu1 %v935_v44 }
 0xd75   :  { %v934_v11 = vpop.xlane.xlu1 %933 }
 0xd76   :  { %v938_v12 = vmul.f32 0.03125, %v934_v11 }
 0xd78   :  { %v940_v13 = vadd.f32 1e-12, %v938_v12 }
 0xd79   :  { %v937_v14 = vpop.xlane.xlu1 %936 }
 0xd7a   :  { %2630 = vrsqrt.f32 %v940_v13  ;;  %v939_v16 = vmul.f32 0.03125, %v937_v14 }
 0xd7c   :  { %v941_v17 = vadd.f32 1e-12, %v939_v16 }
 0xd7e   :  { %2632 = vrsqrt.f32 %v941_v17 }
 0xd84   :  { %v2631_v20 = vpop.eup %2630 }
 0xd85   :  { %v944_v25 = vmul.f32 %v2631_v20, %v928_v3 }
 0xd87   :  { %v950_v27 = vmul.f32 %v949_v21, %v944_v25 }
 0xd88   :  { %v2633_v26 = vpop.eup %2632 }
 0xd89   :  { %v945_v28 = vmul.f32 %v2633_v26, %v929_v7  ;;  %v956_v32 = vadd.f32 %v955_v30, %v950_v27 }
 0xd8b   :  { %v951_v31 = vmul.f32 %v949_v21, %v945_v28  ;;  %v2586_v28 = vld [vmem:[%s3280_s5 + $0x10] sm:$0xff]  }
 0xd8d   :  { %v957_v33 = vadd.f32 %v955_v30, %v951_v31  ;;  %v2587_v30 = vld [vmem:[%s3280_s5 + $0x18] sm:$0xff]  }
 0xd8f   :  { %v958_v34 = vpack.c.bf16 %v957_v33, %v956_v32 }
 0xd91   :  { %2448 = vmatmul.mubr.msk.bf16.vlgmr.msra.gmra.mrb[32].mxu0 %vm177_vm2, %v958_v34 }
 0xd92   :  { %2467 = vmatprep.mubr.msk.bf16.mxu0 %vm2713_vm1, %v2712_v15  ;;  %2464 = vmatpush3.bf16.msra.mxu0 %v2586_v28 }
 0xd93   :  { %2465 = vmatprep.subr.bf16.mxu0 %v2712_v15 }
 0xd96   :  { %2466 = vmatpush3.bf16.msra.mxu0 %v2587_v30 }
 0xd97   :  { %2471 = vmatprep.subr.bf16.mxu0 %v2712_v15 }
 0xe64   :  { %v1019_v55 = vpop.f32.mrb[32].mxu0 }
 0xe65   :  { %v1020_v40 = vadd.f32 %v2227_v39, %v1019_v55  ;;  %v2449_v19 = vpop.f32.mrb[33].mxu0 }
 0xe66   :  { %v1022_v22 = vpop.f32.mrb[34].mxu0 }
 0xe67   :  { %v1028_v41 = vmul.f32 0.044715, %v1020_v40  ;;  %v1023_v42 = vadd.f32 %v2227_v39, %v1022_v22  ;;  %v2450_v43 = vpop.f32.mrb[35].mxu0  ;;  %v1026_v60 = vmul.f32 0.5, %v1020_v40  ;;  %v1157_v39 = vrot.slane %v3012_v18, %v1156_v37 }
 0xe69   :  { %v1030_v46 = vmul.f32 %v1028_v41, %v1020_v40  ;;  %v1029_v47 = vmul.f32 0.044715, %v1023_v42  ;;  %v1027_v62 = vmul.f32 0.5, %v1023_v42 }
 0xe6b   :  { %v1032_v49 = vmul.f32 %v1030_v46, %v1020_v40  ;;  %v1031_v50 = vmul.f32 %v1029_v47, %v1023_v42 }
 0xe6d   :  { %v1034_v51 = vadd.f32 %v1032_v49, %v1020_v40  ;;  %v1033_v52 = vmul.f32 %v1031_v50, %v1023_v42  ;;  %v1162_v40 = vsub.s32 3, %v2816_v23  ;;  %v2243_v50 = vld [vmem:[%s3282_s7 + $0x1] ss:$0 sm:$0xff] }
 0xe6f   :  { %v1036_v53 = vmul.f32 0.7978846, %v1034_v51  ;;  %v1035_v54 = vadd.f32 %v1033_v52, %v1023_v42  ;;  %v1163_v42 = vrot.slane %v3012_v18, %v1162_v40 }
 0xe71   :  { %2634 = vtanh.f32 %v1036_v53  ;;  %v1037_v56 = vmul.f32 0.7978846, %v1035_v54 }
 0xe73   :  { %2636 = vtanh.f32 %v1037_v56 }
 0xe7b   :  { %v2635_v57 = vpop.eup %2634 }
 0xe7c   :  { %v1040_v58 = vadd.f32 1.0, %v2635_v57 }
 0xe7d   :  { %v2637_v59 = vpop.eup %2636 }
 0xe7e   :  { %v1041_v0 = vadd.f32 1.0, %v2637_v59  ;;  %v1042_v1 = vmul.f32 %v1040_v58, %v1026_v60 }
 0xe80   :  { %v1043_v2 = vmul.f32 %v1041_v0, %v1027_v62 }
 0xe82   :  { %v1044_v3 = vpack.c.bf16 %v1043_v2, %v1042_v1 }
 0xe84   :  { %2460 = vmatmul.mubr.msk.bf16.vlgmr.msra.gmra.mrb[24].mxu1 %vm1081_vm5, %v1044_v3 }
 0xe85   :  { %2479 = vmatprep.mubr.msk.bf16.mxu1 %vm2713_vm1, %v2712_v15 }
 0xf57   :  { %v1119_v5 = vpop.f32.mrb[24].mxu1 }
 0xf58   :  { %v1120_v6 = vadd.f32 %v1119_v5, %v1056_v4  ;;  %v2461_v7 = vpop.f32.mrb[25].mxu1 }
 0xf59   :  { %v1122_v8 = vpop.f32.mrb[26].mxu1 }
 0xf5a   :  { %v1123_v9 = vadd.f32 %v1122_v8, %v1056_v4  ;;  %v2462_v44 = vpop.f32.mrb[27].mxu1  ;;  %v1126_v45 = vadd.f32 %v1120_v6, %v956_v32 }
 0xf5c   :  { %v1128_v10 = vsel %vm177_vm2, %v1126_v45, 0.0  ;;  %v1127_v11 = vadd.f32 %v1123_v9, %v957_v33 }
 0xf5d   :  { %1129 = vadd.xlane.f32.xlu1 %v1128_v10 }
 0xf5e   :  { %v1131_v12 = vsel %vm177_vm2, %v1127_v11, 0.0 }
 0xf61   :  { %1132 = vadd.xlane.f32.xlu1 %v1131_v12 }
 0xfea   :  { %v1130_v13 = vpop.xlane.xlu1 %1129 }
 0xfeb   :  { %v1134_v14 = vmul.f32 0.03125, %v1130_v13 }
 0xfed   :  { %v1136_v16 = vsub.f32 %v1126_v45, %v1134_v14 }
 0xfee   :  { %v1133_v17 = vpop.xlane.xlu1 %1132 }
 0xfef   :  { %v1135_v20 = vmul.f32 0.03125, %v1133_v17  ;;  %v1138_v48 = vmul.f32 %v1136_v16, %v1136_v16 }
 0xff1   :  { %v1137_v21 = vsub.f32 %v1127_v11, %v1135_v20  ;;  %v1140_v25 = vsel %vm177_vm2, %v1138_v48, 0.0 }
 0xff2   :  { %1141 = vadd.xlane.f32.xlu0 %v1140_v25 }
 0xff3   :  { %v1139_v26 = vmul.f32 %v1137_v21, %v1137_v21 }
 0xff5   :  { %v1143_v27 = vsel %vm177_vm2, %v1139_v26, 0.0 }
 0xff6   :  { %1144 = vadd.xlane.f32.xlu1 %v1143_v27 }
0x107f   :  { %v1142_v31 = vpop.xlane.xlu0 %1141 }
0x1080   :  { %v1146_v32 = vmul.f32 0.03125, %v1142_v31 }
0x1082   :  { %v1148_v33 = vadd.f32 1e-12, %v1146_v32 }
0x1083   :  { %v1145_v34 = vpop.xlane.xlu1 %1144 }
0x1084   :  { %2638 = vrsqrt.f32 %v1148_v33  ;;  %v1147_v35 = vmul.f32 0.03125, %v1145_v34 }
0x1086   :  { %v1149_v36 = vadd.f32 1e-12, %v1147_v35 }
0x1088   :  { %2640 = vrsqrt.f32 %v1149_v36 }
0x108e   :  { %v2639_v38 = vpop.eup %2638 }
0x108f   :  { %v1152_v55 = vmul.f32 %v2639_v38, %v1136_v16 }
0x1091   :  { %v1158_v22 = vmul.f32 %v1157_v39, %v1152_v55 }
0x1092   :  { %v2641_v19 = vpop.eup %2640 }
0x1093   :  { %v1153_v41 = vmul.f32 %v2641_v19, %v1137_v21  ;;  %v3065_v46 = vadd.f32 %v1163_v42, %v1158_v22 }
0x1095   :  { %v1159_v43 = vmul.f32 %v1157_v39, %v1153_v41 }
0x1097   :  { %v3067_v47 = vadd.f32 %v1163_v42, %v1159_v43 }
0x1099   :  { %v1170_v49 = vpack.c.bf16 %v3067_v47, %v3065_v46 }
0x109b   :  { %2468 = vmatmul.mubr.msk.bf16.vlgmr.msra.gmra.mrb[36].mxu0 %vm177_vm2, %v1170_v49 }
0x109c   :  { %2473 = vmatprep.mubr.msk.bf16.mxu0 %vm2713_vm1, %v2712_v15 }
0x116e   :  { %v1233_v51 = vpop.f32.mrb[36].mxu0 }
0x116f   :  { %v2469_v52 = vpop.f32.mrb[37].mxu0  ;;  %v1234_v53 = vadd.f32 %v2243_v50, %v1233_v51 }
0x1170   :  { %v1236_v18 = vpop.f32.mrb[38].mxu0 }
0x1171   :  { %v1237_v54 = vadd.f32 %v2243_v50, %v1236_v18  ;;  %v2470_v56 = vpop.f32.mrb[39].mxu0 }
0x1173   :  { %v3077_v57 = vpack.c.bf16 %v1237_v54, %v1234_v53 }
0x1175   :  { %1242 = vrot.lane.b32.xlu1 %v3077_v57, %s2715_s21 }
0x1179   :  { %1366 = vrot.lane.b32.xlu1 %v3077_v57, %s2714_s4 }
0x117d   :  { %1364 = vrot.lane.b32.xlu1 %v3077_v57, %s2716_s22 }
0x11e7   :  { %v1243_v58 = vpop.permute.xlu1 %1242 }
0x11e8   :  { %v1248_v59 = vsel %vm226_vm3, %v1243_v58, 0 }
0x11e9   :  { %2472 = vmatpush3.bf16.xpose.msra.mxu0 %v1248_v59 }
0x11ea   :  { %2483 = vmatprep.subr.bf16.mxu0 %v2712_v15 }
0x11eb   :  { %v1367_v60 = vpop.permute.xlu1 %1366 }
0x11ec   :  { %v1372_v62 = vsel %vm226_vm3, %v1367_v60, 0  ;;  %v2249_v60 = vld [vmem:[%s3281_s6 + $0x10] sm:$0xf] }
0x11ef   :  { %v1365_v0 = vpop.permute.xlu1 %1364 }
0x11f0   :  { %2474 = vmatmul.mubr.msk.bf16.vlgmr.msra.gmra.mrb[40].mxu0 %vm226_vm3, %v3077_v57 }
0x11f1   :  { %2484 = vmatpush3.bf16.xpose.msra.mxu0 %v1372_v62  ;;  %2485 = vmatprep.mubr.msk.bf16.mxu0 %vm2713_vm1, %v2712_v15  ;;  %v1539_v62 = vsel %vm473_vm4, %v2249_v60, 0 }
0x11f2   :  { %2495 = vmatprep.subr.bf16.mxu0 %v2712_v15 }
0x11f8   :  { %2486 = vmatmul.mubr.msk.bf16.vlgmr.msra.gmra.mrb[44].mxu0 %vm226_vm3, %v1365_v0  ;;  %v2252_v0 = vld [vmem:[%s3281_s6 + $0x14] sm:$0xf] }
0x11f9   :  { %2497 = vmatprep.mubr.msk.bf16.mxu0 %vm2713_vm1, %v2712_v15 }
0x12c3   :  { %v1284_v1 = vpop.f32.mrb[40].mxu0 }
0x12c4   :  { %v1285_v2 = vadd.f32 %v1284_v1, %v2877_v61  ;;  %v2475_v3 = vpop.f32.mrb[41].mxu0  ;;  %v1492_v1 = vsel %vm473_vm4, %v2252_v0, 0 }
0x12c5   :  { %v1287_v4 = vpop.f32.mrb[42].mxu0  ;;  %2496 = vmatpush3.bf16.msra.mxu0 %v1492_v1  ;;  %v2257_v1 = vld [vmem:[%s3281_s6 + $0x18] sm:$0xf] }
0x12c6   :  { %v1288_v5 = vadd.f32 %v1287_v4, %v2882_v63  ;;  %v2476_v6 = vpop.f32.mrb[43].mxu0  ;;  %v1291_v7 = vsel %vm49_vm0, %v1285_v2, -inf  ;;  %2507 = vmatprep.subr.bf16.mxu0 %v2712_v15 }
0x12c7   :  { %1292 = vmax.xlane.f32.xlu0 %v1291_v7 }
0x12c8   :  { %v1294_v8 = vsel %vm49_vm0, %v1288_v5, -inf }
0x12c9   :  { %1295 = vmax.xlane.f32.xlu1 %v1294_v8 }
0x12cb   :  { %v1408_v9 = vpop.f32.mrb[44].mxu0 }
0x12cc   :  { %v1409_v44 = vadd.f32 %v1408_v9, %v2877_v61  ;;  %v2487_v45 = vpop.f32.mrb[45].mxu0 }
0x12cd   :  { %v1411_v10 = vpop.f32.mrb[46].mxu0 }
0x12ce   :  { %v1412_v11 = vadd.f32 %v1411_v10, %v2882_v63  ;;  %v2488_v12 = vpop.f32.mrb[47].mxu0  ;;  %v1415_v13 = vsel %vm49_vm0, %v1409_v44, -inf }
0x12cf   :  { %1416 = vmax.xlane.f32.xlu0 %v1415_v13 }
0x12d0   :  { %v1418_v14 = vsel %vm49_vm0, %v1412_v11, -inf }
0x12d3   :  { %1419 = vmax.xlane.f32.xlu0 %v1418_v14 }
0x12da   :  { %1438 = vrot.lane.b32.xlu1 %v3077_v57, %s2720_s29 }
0x12de   :  { %1582 = vrot.lane.b32.xlu1 %v3077_v57, %s2719_s0 }
0x1354   :  { %v1293_v16 = vpop.xlane.xlu0 %1292 }
0x1355   :  { %v1297_v17 = vsub.f32 %v1285_v2, %v1293_v16 }
0x1356   :  { %v1296_v61 = vpop.xlane.xlu1 %1295 }
0x1357   :  { %v1299_v20 = vmul.f32 1.442695, %v1297_v17  ;;  %v1298_v48 = vsub.f32 %v1288_v5, %v1296_v61 }
0x1359   :  { %2642 = vpow2.f32 %v1299_v20  ;;  %v1301_v63 = vmul.f32 1.442695, %v1298_v48 }
0x135a   :  { %v1439_v18 = vpop.permute.xlu1 %1438 }
0x135b   :  { %2644 = vpow2.f32 %v1301_v63 }
0x135c   :  { %v1417_v21 = vpop.xlane.xlu0 %1416 }
0x135d   :  { %v1421_v25 = vsub.f32 %v1409_v44, %v1417_v21 }
0x135e   :  { %v1583_v12 = vpop.permute.xlu1 %1582 }
0x135f   :  { %v1423_v26 = vmul.f32 1.442695, %v1421_v25 }
0x1360   :  { %v1420_v27 = vpop.xlane.xlu0 %1419 }
0x1361   :  { %2646 = vpow2.f32 %v1423_v26  ;;  %v1422_v28 = vsub.f32 %v1412_v11, %v1420_v27  ;;  %v2686_v27 = vld [vmem:[%s3276_s1] sm:$0xff] }
0x1363   :  { %v2643_v30 = vpop.eup %2642  ;;  %v1425_v31 = vmul.f32 1.442695, %v1422_v28 }
0x1364   :  { %v1303_v32 = vsel %vm49_vm0, %v2643_v30, 0.0 }
0x1365   :  { %v2645_v33 = vpop.eup %2644  ;;  %2648 = vpow2.f32 %v1425_v31  ;;  %1304 = vadd.xlane.f32.xlu0 %v1303_v32  ;;  %v2687_v32 = vld [vmem:[%s3276_s1 + $0x8] sm:$0xff] }
0x1366   :  { %v1306_v34 = vsel %vm49_vm0, %v2645_v33, 0.0 }
0x1369   :  { %1307 = vadd.xlane.f32.xlu0 %v1306_v34 }
0x136b   :  { %v2647_v35 = vpop.eup %2646 }
0x136c   :  { %v1427_v36 = vsel %vm49_vm0, %v2647_v35, 0.0 }
0x136d   :  { %1428 = vadd.xlane.f32.xlu0 %v1427_v36 }
0x136f   :  { %v2649_v38 = vpop.eup %2648 }
0x1370   :  { %v1430_v39 = vsel %vm49_vm0, %v2649_v38, 0.0 }
0x1371   :  { %1431 = vadd.xlane.f32.xlu0 %v1430_v39 }
0x1387   :  { %1314 = vrot.lane.b32.xlu0 %v3077_v57, %s2717_s27 }
0x138b   :  { %1584 = vrot.lane.b32.xlu0 %v3077_v57, %s2718_s28 }
0x13f2   :  { %v1305_v55 = vpop.xlane.xlu0 %1304 }
0x13f3   :  { %2650 = vrcp.f32 %v1305_v55 }
0x13f6   :  { %v1308_v19 = vpop.xlane.xlu0 %1307 }
0x13f7   :  { %2652 = vrcp.f32 %v1308_v19 }
0x13fa   :  { %v1429_v22 = vpop.xlane.xlu0 %1428 }
0x13fb   :  { %2654 = vrcp.f32 %v1429_v22 }
0x13fd   :  { %v2651_v42 = vpop.eup %2650 }
0x13fe   :  { %v1432_v41 = vpop.xlane.xlu0 %1431  ;;  %v1311_v49 = vmul.f32 %v2651_v42, %v2643_v30 }
0x13ff   :  { %2656 = vrcp.f32 %v1432_v41 }
0x1401   :  { %v2653_v43 = vpop.eup %2652 }
0x1402   :  { %v1312_v50 = vmul.f32 %v2653_v43, %v2645_v33  ;;  %v1315_v51 = vpop.permute.xlu0 %1314 }
0x1403   :  { %2478 = vmatpush3.bf16.msra.mxu1 %v1315_v51 }
0x1404   :  { %v1313_v52 = vpack.c.bf16 %v1312_v50, %v1311_v49  ;;  %2489 = vmatprep.subr.bf16.mxu1 %v2712_v15 }
0x1405   :  { %v2655_v53 = vpop.eup %2654 }
0x1406   :  { %2480 = vmatmul.mubr.msk.bf16.vlgmr.msra.gmra.mrb[28].mxu1 %vm49_vm0, %v1313_v52  ;;  %v1435_v56 = vmul.f32 %v2655_v53, %v2647_v35  ;;  %v1585_v9 = vpop.permute.xlu0 %1584 }
0x1407   :  { %2490 = vmatpush3.bf16.msra.mxu1 %v1439_v18  ;;  %2491 = vmatprep.mubr.msk.bf16.mxu1 %vm2713_vm1, %v2712_v15  ;;  %v1590_v11 = vsel %vm226_vm3, %v1585_v9, 0 }
0x1408   :  { %2501 = vmatprep.subr.bf16.mxu1 %v2712_v15 }
0x1409   :  { %v2657_v54 = vpop.eup %2656 }
0x140a   :  { %v1436_v58 = vmul.f32 %v2657_v54, %v2649_v38 }
0x140c   :  { %v1437_v59 = vpack.c.bf16 %v1436_v58, %v1435_v56 }
0x140e   :  { %2492 = vmatmul.mubr.msk.bf16.vlgmr.msra.gmra.mrb[32].mxu1 %vm49_vm0, %v1437_v59 }
0x140f   :  { %2503 = vmatprep.mubr.msk.bf16.mxu1 %vm2713_vm1, %v2712_v15  ;;  %2502 = vmatpush3.bf16.msra.mxu1 %v1539_v62 }
0x1410   :  { %2513 = vmatprep.subr.bf16.mxu1 %v2712_v15 }
0x14d9   :  { %v1354_v2 = vpop.f32.mrb[28].mxu1 }
0x14da   :  { %v2481_v3 = vpop.f32.mrb[29].mxu1 }
0x14db   :  { %v1357_v4 = vpop.f32.mrb[30].mxu1 }
0x14dc   :  { %v1361_v5 = vpack.c.bf16 %v1357_v4, %v1354_v2  ;;  %v2482_v6 = vpop.f32.mrb[31].mxu1  ;;  %v1710_v2 = vsel %vm473_vm4, %v2257_v1, 0 }
0x14de   :  { %2504 = vmatmul.mubr.msk.bf16.vlgmr.msra.gmra.mrb[36].mxu1 %vm226_vm3, %v1361_v5 }
0x14df   :  { %2515 = vmatprep.mubr.msk.bf16.mxu1 %vm2713_vm1, %v2712_v15 }
0x14e1   :  { %v1478_v7 = vpop.f32.mrb[32].mxu1 }
0x14e2   :  { %v2493_v8 = vpop.f32.mrb[33].mxu1 }
0x14e3   :  { %v1481_v44 = vpop.f32.mrb[34].mxu1 }
0x14e4   :  { %v1485_v45 = vpack.c.bf16 %v1481_v44, %v1478_v7  ;;  %v2494_v10 = vpop.f32.mrb[35].mxu1 }
0x14e6   :  { %2498 = vmatmul.mubr.msk.bf16.vlgmr.msra.gmra.mrb[48].mxu0 %vm226_vm3, %v1485_v45 }
0x14e7   :  { %2508 = vmatpush3.bf16.xpose.msra.mxu0 %v1590_v11  ;;  %2509 = vmatprep.mubr.msk.bf16.mxu0 %vm2713_vm1, %v2712_v15 }
0x14e8   :  { %2519 = vmatprep.subr.bf16.mxu0 %v2712_v15 }
0x14ee   :  { %2510 = vmatmul.mubr.msk.bf16.vlgmr.msra.gmra.mrb[52].mxu0 %vm226_vm3, %v1583_v12 }
0x14ef   :  { %2521 = vmatprep.mubr.msk.bf16.mxu0 %vm2713_vm1, %v2712_v15  ;;  %2520 = vmatpush3.bf16.msra.mxu0 %v1710_v2 }
0x14f0   :  { %2531 = vmatprep.subr.bf16.mxu0 %v2712_v15 }
0x15b1   :  { %v1575_v13 = vpop.f32.mrb[36].mxu1 }
0x15b2   :  { %v2505_v14 = vpop.f32.mrb[37].mxu1 }
0x15b3   :  { %v1578_v16 = vpop.f32.mrb[38].mxu1 }
0x15b4   :  { %v2506_v17 = vpop.f32.mrb[39].mxu1 }
0x15b9   :  { %v1528_v61 = vpop.f32.mrb[48].mxu0 }
0x15ba   :  { %v3145_v20 = vadd.f32 %v1575_v13, %v1528_v61  ;;  %v2499_v48 = vpop.f32.mrb[49].mxu0 }
0x15bb   :  { %v1531_v63 = vpop.f32.mrb[50].mxu0 }
0x15bc   :  { %v3147_v21 = vadd.f32 %v1578_v16, %v1531_v63  ;;  %v2500_v25 = vpop.f32.mrb[51].mxu0 }
0x15c1   :  { %v1626_v26 = vpop.f32.mrb[52].mxu0 }
0x15c2   :  { %v1627_v28 = vadd.f32 %v2686_v27, %v1626_v26  ;;  %v2511_v30 = vpop.f32.mrb[53].mxu0 }
0x15c3   :  { %v1629_v31 = vpop.f32.mrb[54].mxu0 }
0x15c4   :  { %v1630_v33 = vadd.f32 %v2687_v32, %v1629_v31  ;;  %v2512_v34 = vpop.f32.mrb[55].mxu0  ;;  %v1633_v35 = vsel %vm49_vm0, %v1627_v28, -inf }
0x15c5   :  { %1634 = vmax.xlane.f32.xlu0 %v1633_v35 }
0x15c6   :  { %v1636_v36 = vsel %vm49_vm0, %v1630_v33, -inf }
0x15c7   :  { %1637 = vmax.xlane.f32.xlu1 %v1636_v36 }
0x15d8   :  { %1757 = vrot.lane.b32.xlu1 %v3077_v57, %s2723_s17 }
0x15dc   :  { %1755 = vrot.lane.b32.xlu1 %v3077_v57, %s2722_s16 }
0x1652   :  { %v1635_v38 = vpop.xlane.xlu0 %1634 }
0x1653   :  { %v1639_v39 = vsub.f32 %v1627_v28, %v1635_v38 }
0x1654   :  { %v1638_v55 = vpop.xlane.xlu1 %1637 }
0x1655   :  { %v1641_v19 = vmul.f32 1.442695, %v1639_v39  ;;  %v1640_v22 = vsub.f32 %v1630_v33, %v1638_v55 }
0x1657   :  { %2658 = vpow2.f32 %v1641_v19  ;;  %v1643_v41 = vmul.f32 1.442695, %v1640_v22 }
0x1658   :  { %v1758_v59 = vpop.permute.xlu1 %1757 }
0x1659   :  { %2660 = vpow2.f32 %v1643_v41  ;;  %v1763_v62 = vsel %vm226_vm3, %v1758_v59, 0 }
0x165c   :  { %v1756_v0 = vpop.permute.xlu1 %1755 }
0x1661   :  { %v2659_v42 = vpop.eup %2658 }
0x1662   :  { %v1645_v43 = vsel %vm49_vm0, %v2659_v42, 0.0 }
0x1663   :  { %v2661_v49 = vpop.eup %2660  ;;  %1646 = vadd.xlane.f32.xlu0 %v1645_v43 }
0x1664   :  { %v1648_v50 = vsel %vm49_vm0, %v2661_v49, 0.0 }
0x1667   :  { %1649 = vadd.xlane.f32.xlu0 %v1648_v50 }
0x167d   :  { %1656 = vrot.lane.b32.xlu0 %v3077_v57, %s2721_s15 }
0x16f0   :  { %v1647_v51 = vpop.xlane.xlu0 %1646 }
0x16f1   :  { %2662 = vrcp.f32 %v1647_v51 }
0x16f4   :  { %v1650_v52 = vpop.xlane.xlu0 %1649 }
0x16f5   :  { %2664 = vrcp.f32 %v1650_v52  ;;  %v3205_v52 = vld [vmem:[%s3283_s8 + $0x2] sm:$0x3] }
0x16f8   :  { %v1657_v18 = vpop.permute.xlu0 %1656 }
0x16f9   :  { %2514 = vmatpush3.bf16.msra.mxu1 %v1657_v18  ;;  %v1931_v18 = vrot.slane %v3205_v52, %v2819_v24 }
0x16fa   :  { %2525 = vmatprep.subr.bf16.mxu1 %v2712_v15 }
0x16fb   :  { %v2663_v53 = vpop.eup %2662 }
0x16fc   :  { %v1653_v56 = vmul.f32 %v2663_v53, %v2659_v42 }
0x16ff   :  { %v2665_v54 = vpop.eup %2664 }
0x1700   :  { %v1654_v58 = vmul.f32 %v2665_v54, %v2661_v49 }
0x1702   :  { %v1655_v60 = vpack.c.bf16 %v1654_v58, %v1653_v56 }
0x1704   :  { %2516 = vmatmul.mubr.msk.bf16.vlgmr.msra.gmra.mrb[40].mxu1 %vm49_vm0, %v1655_v60 }
0x1705   :  { %2526 = vmatpush3.bf16.xpose.msra.mxu1 %v1763_v62  ;;  %2527 = vmatprep.mubr.msk.bf16.mxu1 %vm2713_vm1, %v2712_v15 }
0x1706   :  { %2537 = vmatprep.subr.bf16.mxu1 %v2712_v15 }
0x170c   :  { %2528 = vmatmul.mubr.msk.bf16.vlgmr.msra.gmra.mrb[44].mxu1 %vm226_vm3, %v1756_v0 }
0x170d   :  { %2539 = vmatprep.mubr.msk.bf16.mxu1 %vm2713_vm1, %v2712_v15 }
0x17d7   :  { %v1696_v3 = vpop.f32.mrb[40].mxu1 }
0x17d8   :  { %v2517_v4 = vpop.f32.mrb[41].mxu1 }
0x17d9   :  { %v1699_v5 = vpop.f32.mrb[42].mxu1 }
0x17da   :  { %v1703_v6 = vpack.c.bf16 %v1699_v5, %v1696_v3  ;;  %v2518_v7 = vpop.f32.mrb[43].mxu1 }
0x17dc   :  { %2522 = vmatmul.mubr.msk.bf16.vlgmr.msra.gmra.mrb[56].mxu0 %vm226_vm3, %v1703_v6 }
0x17dd   :  { %2533 = vmatprep.mubr.msk.bf16.mxu0 %vm2713_vm1, %v2712_v15 }
0x17df   :  { %v1799_v8 = vpop.f32.mrb[44].mxu1 }
0x17e0   :  { %v1800_v9 = vadd.f32 %v2686_v27, %v1799_v8  ;;  %v2529_v44 = vpop.f32.mrb[45].mxu1 }
0x17e1   :  { %v1802_v45 = vpop.f32.mrb[46].mxu1 }
0x17e2   :  { %v1803_v10 = vadd.f32 %v2687_v32, %v1802_v45  ;;  %v2530_v11 = vpop.f32.mrb[47].mxu1  ;;  %v1806_v12 = vsel %vm49_vm0, %v1800_v9, -inf }
0x17e3   :  { %1807 = vmax.xlane.f32.xlu1 %v1806_v12  ;;  %v2589_v12 = vld [vmem:[%s3285_s10 + $0x18] sm:$0xff]  }
0x17e4   :  { %v1809_v13 = vsel %vm49_vm0, %v1803_v10, -inf }
0x17e5   :  { %1810 = vmax.xlane.f32.xlu0 %v1809_v13 }
0x17f4   :  { %1829 = vrot.lane.b32.xlu1 %v3077_v57, %s2724_s20 }
0x1870   :  { %v1808_v14 = vpop.xlane.xlu1 %1807 }
0x1871   :  { %v1812_v16 = vsub.f32 %v1800_v9, %v1808_v14 }
0x1872   :  { %v1811_v17 = vpop.xlane.xlu0 %1810 }
0x1873   :  { %v1814_v61 = vmul.f32 1.442695, %v1812_v16  ;;  %v1813_v48 = vsub.f32 %v1803_v10, %v1811_v17 }
0x1874   :  { %v1830_v63 = vpop.permute.xlu1 %1829 }
0x1875   :  { %2666 = vpow2.f32 %v1814_v61  ;;  %v1816_v25 = vmul.f32 1.442695, %v1813_v48  ;;  %2532 = vmatpush3.bf16.msra.mxu0 %v1830_v63  ;;  %v3225_v63 = vld [vmem:[%s3284_s9 + $0x4] sm:$0xf] }
0x1876   :  { %2543 = vmatprep.subr.bf16.mxu0 %v2712_v15 }
0x1877   :  { %2668 = vpow2.f32 %v1816_v25 }
0x187f   :  { %v2667_v26 = vpop.eup %2666 }
0x1880   :  { %v1818_v27 = vsel %vm49_vm0, %v2667_v26, 0.0 }
0x1881   :  { %v2669_v28 = vpop.eup %2668  ;;  %1819 = vadd.xlane.f32.xlu0 %v1818_v27 }
0x1882   :  { %v1821_v30 = vsel %vm49_vm0, %v2669_v28, 0.0 }
0x1885   :  { %1822 = vadd.xlane.f32.xlu0 %v1821_v30 }
0x18af   :  { %v1746_v57 = vpop.f32.mrb[56].mxu0 }
0x18b0   :  { %v1753_v31 = vadd.f32 %v1746_v57, %v3145_v20  ;;  %v2523_v32 = vpop.f32.mrb[57].mxu0  ;;  %v2261_v20 = vld [vmem:[%s3281_s6 + $0x1c] sm:$0xf] }
0x18b1   :  { %v1749_v33 = vpop.f32.mrb[58].mxu0 }
0x18b2   :  { %v1754_v34 = vadd.f32 %v1749_v33, %v3147_v21  ;;  %v2524_v35 = vpop.f32.mrb[59].mxu0  ;;  %v1883_v21 = vsel %vm473_vm4, %v2261_v20, 0 }
0x18b3   :  { %2538 = vmatpush3.bf16.msra.mxu1 %v1883_v21 }
0x18b4   :  { %2551 = vmatprep.subr.bf16.mxu1 %v2712_v15 }
0x190e   :  { %v1820_v36 = vpop.xlane.xlu0 %1819 }
0x190f   :  { %2670 = vrcp.f32 %v1820_v36  ;;  %v2590_v36 = vld [vmem:[%s3287_s12 + $0x20] sm:$0xff]  }
0x1912   :  { %v1823_v38 = vpop.xlane.xlu0 %1822 }
0x1913   :  { %2672 = vrcp.f32 %v1823_v38  ;;  %v2592_v38 = vld [vmem:[%s3287_s12 + $0x30] sm:$0xff]  }
0x1919   :  { %v2671_v39 = vpop.eup %2670 }
0x191a   :  { %v1826_v19 = vmul.f32 %v2671_v39, %v2667_v26  ;;  %v1965_v26 = vrot.slane %v3225_v63, %v2819_v24  ;;  %v2591_v24 = vld [vmem:[%s3287_s12 + $0x28] sm:$0xff]   ;;  %v2593_v39 = vld [vmem:[%s3287_s12 + $0x38] sm:$0xff]  }
0x191d   :  { %v2673_v55 = vpop.eup %2672 }
0x191e   :  { %v1827_v22 = vmul.f32 %v2673_v55, %v2669_v28  ;;  %v2268_v55 = vld [vmem:[%s3286_s11 + $0x1] ss:$0 sm:$0xff]  ;;  %s2725_s11 = smov [#allocation2]  }
0x191f   :  { %s2197_s12 = sshll.u32 %s2725_s11, 4  ;;  %s2198_s12 = int_to_ptr.vmem [resolvable:$true] %s2197_s12 }
0x1920   :  { %v1828_v41 = vpack.c.bf16 %v1827_v22, %v1826_v19  ;;  %s2688_s21 = scalar_lea.vmem %s2198_s12, 32  ;;  %p2693_p1 = scmp.lt.s32.totalorder %s2198_s12, %s2198_s12 }
0x1921   :  { %p2689_p0 = scmp.ne.s32.totalorder %s2198_s12, %s2688_s21  ;;  %p2694_p2 = scmp.lt.s32.totalorder %s2688_s21, %s2688_s21 }
0x1922   :  { %2534 = vmatmul.mubr.msk.bf16.vlgmr.msra.gmra.mrb[60].mxu0 %vm49_vm0, %v1828_v41 }
0x1923   :  { %2547 = vmatprep.mubr.msk.bf16.mxu0 %vm2713_vm1, %v2712_v15  ;;  %p2695_p3 = por %p2694_p2, %p2693_p1 }
0x1925   :  { %p2696_p4 = pnand %p2695_p3, %p2689_p0 }
0x19f5   :  { %v1869_v42 = vpop.f32.mrb[60].mxu0 }
0x19f6   :  { %v2535_v43 = vpop.f32.mrb[61].mxu0 }
0x19f7   :  { %v1872_v49 = vpop.f32.mrb[62].mxu0 }
0x19f8   :  { %v1876_v50 = vpack.c.bf16 %v1872_v49, %v1869_v42  ;;  %v2536_v51 = vpop.f32.mrb[63].mxu0 }
0x19fa   :  { %2540 = vmatmul.mubr.msk.bf16.vlgmr.msra.gmra.mrb[48].mxu1 %vm226_vm3, %v1876_v50 }
0x19fb   :  { %2559 = vmatprep.mubr.msk.bf16.mxu1 %vm2713_vm1, %v2712_v15  ;;  %2552 = vmatpush3.bf16.msra.mxu1 %v2590_v36  ;;  %v2181_v36 = vrot.slane %v3225_v63, %v1162_v40 }
0x19fc   :  { %2553 = vmatprep.subr.bf16.mxu1 %v2712_v15 }
0x19ff   :  { %2554 = vmatpush3.bf16.msra.mxu1 %v2591_v24 }
0x1a00   :  { %2555 = vmatprep.subr.bf16.mxu1 %v2712_v15 }
0x1a03   :  { %2556 = vmatpush3.bf16.msra.mxu1 %v2592_v38 }
0x1a04   :  { %2557 = vmatprep.subr.bf16.mxu1 %v2712_v15 }
0x1a07   :  { %2558 = vmatpush3.bf16.msra.mxu1 %v2593_v39 }
0x1acd   :  { %v1919_v53 = vpop.f32.mrb[48].mxu1 }
0x1ace   :  { %v1926_v54 = vadd.f32 %v1919_v53, %v1753_v31  ;;  %v2541_v56 = vpop.f32.mrb[49].mxu1  ;;  %v1971_v31 = vrot.slane %v3225_v63, %v2826_v29 }
0x1acf   :  { %v1922_v58 = vpop.f32.mrb[50].mxu1 }
0x1ad0   :  { %v1932_v59 = vadd.f32 %v1931_v18, %v1926_v54  ;;  %v1927_v60 = vadd.f32 %v1922_v58, %v1754_v34  ;;  %v2542_v62 = vpop.f32.mrb[51].mxu1 }
0x1ad2   :  { %v1933_v0 = vadd.f32 %v1931_v18, %v1927_v60  ;;  %v1934_v1 = vadd.f32 %v1932_v59, %v3065_v46 }
0x1ad4   :  { %v1936_v2 = vsel %vm177_vm2, %v1934_v1, 0.0  ;;  %v1935_v3 = vadd.f32 %v1933_v0, %v3067_v47  ;;  %v2588_v47 = vld [vmem:[%s3285_s10 + $0x10] sm:$0xff]  }
0x1ad5   :  { %1937 = vadd.xlane.f32.xlu0 %v1936_v2  ;;  %2544 = vmatpush3.bf16.msra.mxu0 %v2588_v47 }
0x1ad6   :  { %v1939_v4 = vsel %vm177_vm2, %v1935_v3, 0.0  ;;  %2545 = vmatprep.subr.bf16.mxu0 %v2712_v15 }
0x1ad9   :  { %1940 = vadd.xlane.f32.xlu0 %v1939_v4  ;;  %2546 = vmatpush3.bf16.msra.mxu0 %v2589_v12 }
0x1b62   :  { %v1938_v5 = vpop.xlane.xlu0 %1937 }
0x1b63   :  { %v1942_v6 = vmul.f32 0.03125, %v1938_v5 }
0x1b65   :  { %v1944_v7 = vsub.f32 %v1934_v1, %v1942_v6  ;;  %v2075_v6 = vrot.slane %v3205_v52, %v2826_v29 }
0x1b66   :  { %v1941_v8 = vpop.xlane.xlu0 %1940 }
0x1b67   :  { %v1943_v9 = vmul.f32 0.03125, %v1941_v8  ;;  %v1946_v44 = vmul.f32 %v1944_v7, %v1944_v7 }
0x1b69   :  { %v1945_v45 = vsub.f32 %v1935_v3, %v1943_v9  ;;  %v1948_v10 = vsel %vm177_vm2, %v1946_v44, 0.0 }
0x1b6a   :  { %1949 = vadd.xlane.f32.xlu0 %v1948_v10 }
0x1b6b   :  { %v1947_v11 = vmul.f32 %v1945_v45, %v1945_v45 }
0x1b6d   :  { %v1951_v46 = vsel %vm177_vm2, %v1947_v11, 0.0 }
0x1b6e   :  { %1952 = vadd.xlane.f32.xlu0 %v1951_v46 }
0x1bf7   :  { %v1950_v13 = vpop.xlane.xlu0 %1949 }
0x1bf8   :  { %v1954_v14 = vmul.f32 0.03125, %v1950_v13 }
0x1bfa   :  { %v1956_v16 = vadd.f32 1e-12, %v1954_v14 }
0x1bfb   :  { %v1953_v17 = vpop.xlane.xlu0 %1952 }
0x1bfc   :  { %2674 = vrsqrt.f32 %v1956_v16  ;;  %v1955_v61 = vmul.f32 0.03125, %v1953_v17 }
0x1bfe   :  { %v1957_v48 = vadd.f32 1e-12, %v1955_v61 }
0x1c00   :  { %2676 = vrsqrt.f32 %v1957_v48 }
0x1c06   :  { %v2675_v25 = vpop.eup %2674 }
0x1c07   :  { %v1960_v27 = vmul.f32 %v2675_v25, %v1944_v7 }
0x1c09   :  { %v1966_v30 = vmul.f32 %v1965_v26, %v1960_v27 }
0x1c0a   :  { %v2677_v28 = vpop.eup %2676 }
0x1c0b   :  { %v1961_v57 = vmul.f32 %v2677_v28, %v1945_v45  ;;  %v1972_v33 = vadd.f32 %v1971_v31, %v1966_v30 }
0x1c0d   :  { %v1967_v32 = vmul.f32 %v1965_v26, %v1961_v57 }
0x1c0f   :  { %v1973_v34 = vadd.f32 %v1971_v31, %v1967_v32 }
0x1c11   :  { %v1974_v35 = vpack.c.bf16 %v1973_v34, %v1972_v33 }
0x1c13   :  { %2548 = vmatmul.mubr.msk.bf16.vlgmr.msra.gmra.mrb[64].mxu0 %vm177_vm2, %v1974_v35 }
0x1ce6   :  { %v2037_v19 = vpop.f32.mrb[64].mxu0 }
0x1ce7   :  { %v2038_v22 = vadd.f32 %v2268_v55, %v2037_v19  ;;  %v2549_v41 = vpop.f32.mrb[65].mxu0 }
0x1ce8   :  { %v2040_v20 = vpop.f32.mrb[66].mxu0 }
0x1ce9   :  { %v2046_v21 = vmul.f32 0.044715, %v2038_v22  ;;  %v2041_v42 = vadd.f32 %v2268_v55, %v2040_v20  ;;  %v2550_v43 = vpop.f32.mrb[67].mxu0  ;;  %v2044_v0 = vmul.f32 0.5, %v2038_v22 }
0x1ceb   :  { %v2048_v49 = vmul.f32 %v2046_v21, %v2038_v22  ;;  %v2047_v50 = vmul.f32 0.044715, %v2041_v42  ;;  %v2045_v1 = vmul.f32 0.5, %v2041_v42 }
0x1ced   :  { %v2050_v51 = vmul.f32 %v2048_v49, %v2038_v22  ;;  %v2049_v18 = vmul.f32 %v2047_v50, %v2041_v42 }
0x1cef   :  { %v2052_v53 = vadd.f32 %v2050_v51, %v2038_v22  ;;  %v2051_v54 = vmul.f32 %v2049_v18, %v2041_v42 }
0x1cf1   :  { %v2054_v56 = vmul.f32 0.7978846, %v2052_v53  ;;  %v2053_v15 = vadd.f32 %v2051_v54, %v2041_v42 }
0x1cf3   :  { %2678 = vtanh.f32 %v2054_v56  ;;  %v2055_v58 = vmul.f32 0.7978846, %v2053_v15 }
0x1cf5   :  { %2680 = vtanh.f32 %v2055_v58 }
0x1cfd   :  { %v2679_v59 = vpop.eup %2678 }
0x1cfe   :  { %v2058_v60 = vadd.f32 1.0, %v2679_v59 }
0x1cff   :  { %v2681_v62 = vpop.eup %2680 }
0x1d00   :  { %v2059_v2 = vadd.f32 1.0, %v2681_v62  ;;  %v2060_v3 = vmul.f32 %v2058_v60, %v2044_v0 }
0x1d02   :  { %v2061_v4 = vmul.f32 %v2059_v2, %v2045_v1 }
0x1d04   :  { %v2062_v5 = vpack.c.bf16 %v2061_v4, %v2060_v3 }
0x1d06   :  { %2560 = vmatmul.mubr.msk.bf16.vlgmr.msra.gmra.mrb[52].mxu1 %vm1081_vm5, %v2062_v5 }
0x1dd9   :  { %v2137_v7 = vpop.f32.mrb[52].mxu1 }
0x1dda   :  { %v2138_v8 = vadd.f32 %v2137_v7, %v2075_v6  ;;  %v2561_v9 = vpop.f32.mrb[53].mxu1 }
0x1ddb   :  { %v2140_v44 = vpop.f32.mrb[54].mxu1 }
0x1ddc   :  { %v2141_v45 = vadd.f32 %v2140_v44, %v2075_v6  ;;  %v2562_v10 = vpop.f32.mrb[55].mxu1  ;;  %v2144_v11 = vadd.f32 %v2138_v8, %v1972_v33  ;;  %v2175_v33 = vrot.slane %v3225_v63, %v1156_v37 }
0x1dde   :  { %v2146_v46 = vsel %vm177_vm2, %v2144_v11, 0.0  ;;  %v2145_v47 = vadd.f32 %v2141_v45, %v1973_v34 }
0x1ddf   :  { %2147 = vadd.xlane.f32.xlu0 %v2146_v46 }
0x1de0   :  { %v2149_v12 = vsel %vm177_vm2, %v2145_v47, 0.0 }
0x1de1   :  { %2150 = vadd.xlane.f32.xlu1 %v2149_v12 }
0x1e6c   :  { %v2148_v13 = vpop.xlane.xlu0 %2147 }
0x1e6d   :  { %v2152_v14 = vmul.f32 0.03125, %v2148_v13 }
0x1e6e   :  { %v2151_v16 = vpop.xlane.xlu1 %2150 }
0x1e6f   :  { %v2153_v17 = vmul.f32 0.03125, %v2151_v16  ;;  %v2154_v61 = vsub.f32 %v2144_v11, %v2152_v14 }
0x1e71   :  { %v2155_v29 = vsub.f32 %v2145_v47, %v2153_v17  ;;  %v2156_v25 = vmul.f32 %v2154_v61, %v2154_v61 }
0x1e73   :  { %v2157_v52 = vmul.f32 %v2155_v29, %v2155_v29  ;;  %v2158_v26 = vsel %vm177_vm2, %v2156_v25, 0.0 }
0x1e75   :  { %v2161_v48 = vsel %vm177_vm2, %v2157_v52, 0.0 }
0x1e76   :  { %2162 = vadd.xlane.f32.xlu0 %v2161_v48 }
0x1e7a   :  { %2159 = vadd.xlane.f32.xlu0 %v2158_v26 }
0x1f03   :  { %v2163_v27 = vpop.xlane.xlu0 %2162 }
0x1f04   :  { %v2165_v28 = vmul.f32 0.03125, %v2163_v27 }
0x1f06   :  { %v2167_v30 = vadd.f32 1e-12, %v2165_v28 }
0x1f07   :  { %v2160_v57 = vpop.xlane.xlu0 %2159 }
0x1f08   :  { %2682 = vrsqrt.f32 %v2167_v30  ;;  %v2164_v31 = vmul.f32 0.03125, %v2160_v57 }
0x1f0a   :  { %v2166_v32 = vadd.f32 1e-12, %v2164_v31 }
0x1f0c   :  { %2684 = vrsqrt.f32 %v2166_v32 }
0x1f12   :  { %v2683_v34 = vpop.eup %2682 }
0x1f13   :  { %v2171_v35 = vmul.f32 %v2683_v34, %v2155_v29 }
0x1f15   :  { %v2177_v24 = vmul.f32 %v2175_v33, %v2171_v35 }
0x1f16   :  { %v2685_v38 = vpop.eup %2684 }
0x1f17   :  { %v2170_v39 = vmul.f32 %v2685_v38, %v2154_v61  ;;  %v2183_v55 = vadd.f32 %v2181_v36, %v2177_v24 }
0x1f19   :  { %v2176_v19 = vmul.f32 %v2175_v33, %v2170_v39  ;;  %v2185_v41 = vrot.slane %v2183_v55, 7 }
0x1f1b   :  { %v2182_v22 = vadd.f32 %v2181_v36, %v2176_v19 }
0x1f1d   :  { %v2188_v20 = vsel %vm2187_vm6, %v2182_v22, %v2185_v41 }
0x1f1e   :  { %2190 = vst.msk [vmem:[#allocation2] sm:$0x3] %vm2189_vm7, %v2188_v20 }
0x1f1f   :  { %2699 = shalt.err (!%p2696_p4)
}
0x1f20   :  { %s2700_s28 = scalar_lea.hbm %s3288_s13, 32 }
0x1f21   :  { %p2701_p5 = scmp.ne.s32.totalorder %s3288_s13, %s2700_s28  ;;  %p2704_p6 = scmp.lt.u32.totalorder %s2700_s28, %s3288_s13 }
0x1f23   :  { %p2706_p7 = pnand %p2704_p6, %p2701_p5 }
0x1f25   :  { %2709 = shalt.err (!%p2706_p7)
}
0x1f26   :  { %2200 = dma.vmem_to_hbm [thread:$0]  %s2198_s12, 32, %s3288_s13, [#allocation3]  }
0x1f27   :  { %2710 = dma.done.wait [#allocation3], 32  }
0x1f28   :  { %2711 = vsyncadd [#allocation3], 4294967264 }
0x1f29   :  { %2204 = vsyncpa [#allocation3], 1 }

</bundles_post_ra>
